<compile_context>
chip_gen: v7x
topology: tpu7x:2x2x1
jax: 0.10.0
libtpu: 0.0.40
codegen_flags: <defaults>
</compile_context>

<pallas_src>
import math
import jax
import jax.numpy as jnp
from jax.experimental import pallas as pl
from jax.experimental.pallas import tpu as pltpu

INPUT_SIZE = 50
HIDDEN_SIZE = 64
NUM_LAYERS = 2
OUTPUT_SIZE = 2

OUT_PAD = 128          # lane-dense FC output width (sliced back to OUTPUT_SIZE)


def lstm_classifier_kernel(x_ref, wih0_ref, whh0_ref, b0_ref,
                           wih1_ref, whh1_ref, b1_ref,
                           wfc_ref, bfc_ref, out_ref,
                           gates_buf, h0_buf):
    """2-layer LSTM (layer-by-layer) + FC on the last hidden state.

    x_ref    : (T*B, Dp)  bf16  time-major, batch-padded, flattened input
    wih*_ref : (in, 4H)   bf16  input->gates weights (pre-transposed, [i,f,o,g])
    whh*_ref : (H, 4H)    bf16  hidden->gates weights (pre-transposed, [i,f,o,g])
    b*_ref   : (1, 4H)    f32   combined bias (b_ih + b_hh), reordered
    wfc_ref  : (H, Op)    bf16  fc weight (pre-transposed, zero-padded)
    bfc_ref  : (1, Op)    f32   fc bias (zero-padded)
    out_ref  : (B, Op)    f32   padded logits
    gates_buf: (T*B, 4H)  f32   scratch: per-timestep input projections
    h0_buf   : (T*B, H)   f32   scratch: layer-0 hidden states for all t
    """
    TB = x_ref.shape[0]
    B = out_ref.shape[0]
    T = TB // B
    H = whh0_ref.shape[0]

    def cell(gates, c):
        # reordered gate layout: [i, f, o, g]
        sig = jax.nn.sigmoid(gates[:, :3 * H])       # i, f, o in one EUP pass
        g_g = jnp.tanh(gates[:, 3 * H:])
        i_g = sig[:, 0 * H:1 * H]
        f_g = sig[:, 1 * H:2 * H]
        o_g = sig[:, 2 * H:3 * H]
        c_new = f_g * c + i_g * g_g
        h_new = o_g * jnp.tanh(c_new)
        return h_new, c_new

    def run_layer(w_hh, write_h):
        h = jnp.zeros((B, H), jnp.float32)
        c = jnp.zeros((B, H), jnp.float32)
        for t in range(T):                            # T static -> fully unrolled
            rec = jnp.dot(h.astype(jnp.bfloat16), w_hh,
                          preferred_element_type=jnp.float32)
            gates = gates_buf[t * B:(t + 1) * B, :] + rec
            h, c = cell(gates, c)
            if write_h:
                h0_buf[t * B:(t + 1) * B, :] = h
        return h

    # ---- layer 0: one big batched input projection (bias folded once) ----
    gates_buf[...] = (jnp.dot(x_ref[...], wih0_ref[...],
                              preferred_element_type=jnp.float32)
                      + b0_ref[...])
    run_layer(whh0_ref[...], write_h=True)

    # ---- layer 1: project all layer-0 hiddens in one matmul ----
    gates_buf[...] = (jnp.dot(h0_buf[...].astype(jnp.bfloat16), wih1_ref[...],
                              preferred_element_type=jnp.float32)
                      + b1_ref[...])
    h1 = run_layer(whh1_ref[...], write_h=False)

    # ---- FC on the last hidden state ----
    out_ref[...] = (jnp.dot(h1.astype(jnp.bfloat16), wfc_ref[...],
                            preferred_element_type=jnp.float32)
                    + bfc_ref[...])


def init_params(key):
    """Deterministic init mimicking PyTorch's uniform(-1/sqrt(H), 1/sqrt(H))."""
    bound = 1.0 / math.sqrt(HIDDEN_SIZE)
    keys = jax.random.split(key, 10)

    def u(k, shape):
        return jax.random.uniform(k, shape, jnp.float32, -bound, bound)

    w_ih0 = u(keys[0], (4 * HIDDEN_SIZE, INPUT_SIZE))
    w_hh0 = u(keys[1], (4 * HIDDEN_SIZE, HIDDEN_SIZE))
    b_ih0 = u(keys[2], (4 * HIDDEN_SIZE,))
    b_hh0 = u(keys[3], (4 * HIDDEN_SIZE,))
    w_ih1 = u(keys[4], (4 * HIDDEN_SIZE, HIDDEN_SIZE))
    w_hh1 = u(keys[5], (4 * HIDDEN_SIZE, HIDDEN_SIZE))
    b_ih1 = u(keys[6], (4 * HIDDEN_SIZE,))
    b_hh1 = u(keys[7], (4 * HIDDEN_SIZE,))
    w_fc = u(keys[8], (OUTPUT_SIZE, HIDDEN_SIZE))
    b_fc = u(keys[9], (OUTPUT_SIZE,))
    return (w_ih0, w_hh0, b_ih0, b_hh0,
            w_ih1, w_hh1, b_ih1, b_hh1,
            w_fc, b_fc)


def lstm_classifier_forward(x, params):
    """x: (B, T, D) batch_first, like the PyTorch module. Returns (B, OUTPUT_SIZE)."""
    B, T, D = x.shape
    H = HIDDEN_SIZE
    (w_ih0, w_hh0, b_ih0, b_hh0,
     w_ih1, w_hh1, b_ih1, b_hh1,
     w_fc, b_fc) = params

    # --- padding (free host-side): full sublane batch, 16-aligned input dim ---
    B_pad = max(8, ((B + 7) // 8) * 8)
    D_pad = ((D + 15) // 16) * 16

    # PyTorch gate order is [i, f, g, o]; reorder rows to [i, f, o, g] so the
    # three sigmoids act on one contiguous slice inside the kernel.
    perm = jnp.concatenate([jnp.arange(0, 2 * H),
                            jnp.arange(3 * H, 4 * H),
                            jnp.arange(2 * H, 3 * H)])

    def prep_layer(w_ih, w_hh, b_ih, b_hh, in_pad):
        w_ih_r = w_ih[perm]                     # (4H, in)
        w_hh_r = w_hh[perm]                     # (4H, H)
        b_r = (b_ih + b_hh)[perm]               # (4H,)  combined bias
        w_ih_t = (jnp.zeros((in_pad, 4 * H), jnp.float32)
                  .at[:w_ih.shape[1], :].set(w_ih_r.T))
        return (w_ih_t.astype(jnp.bfloat16),
                w_hh_r.T.astype(jnp.bfloat16),
                b_r.reshape(1, -1).astype(jnp.float32))

    wih0_t, whh0_t, b0 = prep_layer(w_ih0, w_hh0, b_ih0, b_hh0, D_pad)
    wih1_t, whh1_t, b1 = prep_layer(w_ih1, w_hh1, b_ih1, b_hh1, H)

    wfc_t = (jnp.zeros((H, OUT_PAD), jnp.float32)
             .at[:, :OUTPUT_SIZE].set(w_fc.T)).astype(jnp.bfloat16)
    bfc = jnp.zeros((1, OUT_PAD), jnp.float32).at[:, :OUTPUT_SIZE].set(b_fc)

    # time-major, batch- and feature-padded, flattened to (T*B_pad, D_pad)
    x_tm = jnp.transpose(x, (1, 0, 2)).astype(jnp.float32)        # (T, B, D)
    x_pad = (jnp.zeros((T, B_pad, D_pad), jnp.float32)
             .at[:, :B, :D].set(x_tm))
    x_flat = x_pad.reshape(T * B_pad, D_pad).astype(jnp.bfloat16)

    vmem = pl.BlockSpec(memory_space=pltpu.MemorySpace.VMEM)
    out_pad = pl.pallas_call(
        lstm_classifier_kernel,
        out_shape=jax.ShapeDtypeStruct((B_pad, OUT_PAD), jnp.float32),
        in_specs=[vmem] * 9,
        out_specs=vmem,
        scratch_shapes=[
            pltpu.VMEM((T * B_pad, 4 * H), jnp.float32),   # gates_buf
            pltpu.VMEM((T * B_pad, H), jnp.float32),       # h0_buf
        ],
    )(x_flat, wih0_t, whh0_t, b0, wih1_t, whh1_t, b1, wfc_t, bfc)

    return out_pad[:B, :OUTPUT_SIZE]


def reference_forward(x, params):
    """Pure-JAX f32 reference matching PyTorch nn.LSTM semantics."""
    (w_ih0, w_hh0, b_ih0, b_hh0,
     w_ih1, w_hh1, b_ih1, b_hh1,
     w_fc, b_fc) = params
    B, T, D = x.shape
    H = HIDDEN_SIZE

    def cell(xt, h, c, w_ih, w_hh, b_ih, b_hh):
        gates = xt @ w_ih.T + h @ w_hh.T + b_ih + b_hh
        i = jax.nn.sigmoid(gates[:, 0 * H:1 * H])
        f = jax.nn.sigmoid(gates[:, 1 * H:2 * H])
        g = jnp.tanh(gates[:, 2 * H:3 * H])
        o = jax.nn.sigmoid(gates[:, 3 * H:4 * H])
        c = f * c + i * g
        h = o * jnp.tanh(c)
        return h, c

    h0 = c0 = h1 = c1 = jnp.zeros((B, H), jnp.float32)
    for t in range(T):
        h0, c0 = cell(x[:, t, :], h0, c0, w_ih0, w_hh0, b_ih0, b_hh0)
        h1, c1 = cell(h0, h1, c1, w_ih1, w_hh1, b_ih1, b_hh1)
    return h1 @ w_fc.T + b_fc


if __name__ == "__main__":
    key = jax.random.PRNGKey(0)
    k_param, k_x = jax.random.split(key)

    B, T = 4, 10
    x = jax.random.uniform(k_x, (B, T, INPUT_SIZE), jnp.float32)
    params = init_params(k_param)

    out = lstm_classifier_forward(x, params)
    out = jax.block_until_ready(out)

    ref = reference_forward(x, params)
    assert out.shape == (B, OUTPUT_SIZE)
    # bf16 MXU operands (f32 accumulation / f32 cell state) -> looser tolerance
    # than the pure-f32 reference.
    assert jnp.allclose(out, ref, atol=3e-2, rtol=3e-2), "mismatch vs reference"

    print("KERNEL_OK")
</pallas_src>

<mosaic_0001>
module attributes {stable_mosaic.version = 11 : i64} {
  func.func @lstm_classifier_kernel(%arg0: memref<80x64xbf16, #tpu.memory_space<vmem>>, %arg1: memref<64x256xbf16, #tpu.memory_space<vmem>>, %arg2: memref<64x256xbf16, #tpu.memory_space<vmem>>, %arg3: memref<1x256xf32, #tpu.memory_space<vmem>>, %arg4: memref<64x256xbf16, #tpu.memory_space<vmem>>, %arg5: memref<64x256xbf16, #tpu.memory_space<vmem>>, %arg6: memref<1x256xf32, #tpu.memory_space<vmem>>, %arg7: memref<64x128xbf16, #tpu.memory_space<vmem>>, %arg8: memref<1x128xf32, #tpu.memory_space<vmem>>, %arg9: memref<8x128xf32, #tpu.memory_space<vmem>>, %arg10: memref<80x256xf32, #tpu.memory_space<vmem>>, %arg11: memref<80x64xf32, #tpu.memory_space<vmem>>) attributes {dimension_semantics = [], scalar_prefetch = 0 : i64, scratch_operands = 2 : i64, tpu.core_type = #tpu.core_type<tc>} {
    %c0 = arith.constant 0 : index
    %c0_0 = arith.constant 0 : index
    %0 = vector.load %arg0[%c0, %c0_0] : memref<80x64xbf16, #tpu.memory_space<vmem>>, vector<80x64xbf16>
    %c0_1 = arith.constant 0 : index
    %c0_2 = arith.constant 0 : index
    %1 = vector.load %arg1[%c0_1, %c0_2] : memref<64x256xbf16, #tpu.memory_space<vmem>>, vector<64x256xbf16>
    %cst = arith.constant dense<0.000000e+00> : vector<80x256xf32>
    %2 = tpu.matmul %0, %1, %cst {dimension_numbers = #tpu.dot_dimension_numbers<[1], [0], [0], [1], [0, 0, 1, 1], [], []>} : vector<80x64xbf16>, vector<64x256xbf16>, vector<80x256xf32> -> vector<80x256xf32>
    %c0_3 = arith.constant 0 : index
    %c0_4 = arith.constant 0 : index
    %3 = vector.load %arg3[%c0_3, %c0_4] : memref<1x256xf32, #tpu.memory_space<vmem>>, vector<1x256xf32>
    %4 = vector.broadcast %3 : vector<1x256xf32> to vector<80x256xf32>
    %5 = arith.addf %2, %4 : vector<80x256xf32>
    %c0_5 = arith.constant 0 : index
    %c0_6 = arith.constant 0 : index
    %6 = vector.load %arg10[%c0_5, %c0_6] : memref<80x256xf32, #tpu.memory_space<vmem>>, vector<80x256xf32>
    tpu.vector_store %arg10[%c0_5, %c0_6], %5 {strides = array<i32>} : memref<80x256xf32, #tpu.memory_space<vmem>>, vector<80x256xf32>,
    %c0_7 = arith.constant 0 : index
    %c0_8 = arith.constant 0 : index
    %7 = vector.load %arg2[%c0_7, %c0_8] : memref<64x256xbf16, #tpu.memory_space<vmem>>, vector<64x256xbf16>
    %cst_9 = arith.constant 0.000000e+00 : f32
    %8 = vector.broadcast %cst_9 : f32 to vector<8x64xf32>
    %cst_10 = arith.constant 0.000000e+00 : f32
    %9 = vector.broadcast %cst_10 : f32 to vector<8x64xf32>
    %10 = arith.truncf %8 : vector<8x64xf32> to vector<8x64xbf16>
    %cst_11 = arith.constant dense<0.000000e+00> : vector<8x256xf32>
    %11 = tpu.matmul %10, %7, %cst_11 {dimension_numbers = #tpu.dot_dimension_numbers<[1], [0], [0], [1], [0, 0, 1, 1], [], []>} : vector<8x64xbf16>, vector<64x256xbf16>, vector<8x256xf32> -> vector<8x256xf32>
    %c0_12 = arith.constant 0 : index
    %c0_13 = arith.constant 0 : index
    %12 = vector.load %arg10[%c0_12, %c0_13] : memref<80x256xf32, #tpu.memory_space<vmem>>, vector<8x256xf32>
    %13 = arith.addf %12, %11 : vector<8x256xf32>
    %14 = vector.extract_strided_slice %13 {offsets = [0, 0], sizes = [8, 192], strides = [1, 1]} : vector<8x256xf32> to vector<8x192xf32>
    %15 = arith.negf %14 : vector<8x192xf32>
    %16 = math.exp %15 : vector<8x192xf32>
    %cst_14 = arith.constant 1.000000e+00 : f32
    %17 = vector.broadcast %cst_14 : f32 to vector<8x192xf32>
    %18 = arith.addf %17, %16 : vector<8x192xf32>
    %19 = arith.divf %17, %18 : vector<8x192xf32>
    %20 = vector.extract_strided_slice %13 {offsets = [0, 192], sizes = [8, 64], strides = [1, 1]} : vector<8x256xf32> to vector<8x64xf32>
    %21 = math.tanh %20 : vector<8x64xf32>
    %22 = vector.extract_strided_slice %19 {offsets = [0, 0], sizes = [8, 64], strides = [1, 1]} : vector<8x192xf32> to vector<8x64xf32>
    %23 = vector.extract_strided_slice %19 {offsets = [0, 64], sizes = [8, 64], strides = [1, 1]} : vector<8x192xf32> to vector<8x64xf32>
    %24 = vector.extract_strided_slice %19 {offsets = [0, 128], sizes = [8, 64], strides = [1, 1]} : vector<8x192xf32> to vector<8x64xf32>
    %25 = arith.mulf %23, %9 : vector<8x64xf32>
    %26 = arith.mulf %22, %21 : vector<8x64xf32>
    %27 = arith.addf %25, %26 : vector<8x64xf32>
    %28 = math.tanh %27 : vector<8x64xf32>
    %29 = arith.mulf %24, %28 : vector<8x64xf32>
    %c0_15 = arith.constant 0 : index
    %c0_16 = arith.constant 0 : index
    %30 = vector.load %arg11[%c0_15, %c0_16] : memref<80x64xf32, #tpu.memory_space<vmem>>, vector<8x64xf32>
    tpu.vector_store %arg11[%c0_15, %c0_16], %29 {strides = array<i32>} : memref<80x64xf32, #tpu.memory_space<vmem>>, vector<8x64xf32>,
    %31 = arith.truncf %29 : vector<8x64xf32> to vector<8x64xbf16>
    %cst_17 = arith.constant dense<0.000000e+00> : vector<8x256xf32>
    %32 = tpu.matmul %31, %7, %cst_17 {dimension_numbers = #tpu.dot_dimension_numbers<[1], [0], [0], [1], [0, 0, 1, 1], [], []>} : vector<8x64xbf16>, vector<64x256xbf16>, vector<8x256xf32> -> vector<8x256xf32>
    %c8 = arith.constant 8 : index
    %c0_18 = arith.constant 0 : index
    %33 = vector.load %arg10[%c8, %c0_18] : memref<80x256xf32, #tpu.memory_space<vmem>>, vector<8x256xf32>
    %34 = arith.addf %33, %32 : vector<8x256xf32>
    %35 = vector.extract_strided_slice %34 {offsets = [0, 0], sizes = [8, 192], strides = [1, 1]} : vector<8x256xf32> to vector<8x192xf32>
    %36 = arith.negf %35 : vector<8x192xf32>
    %37 = math.exp %36 : vector<8x192xf32>
    %cst_19 = arith.constant 1.000000e+00 : f32
    %38 = vector.broadcast %cst_19 : f32 to vector<8x192xf32>
    %39 = arith.addf %38, %37 : vector<8x192xf32>
    %40 = arith.divf %38, %39 : vector<8x192xf32>
    %41 = vector.extract_strided_slice %34 {offsets = [0, 192], sizes = [8, 64], strides = [1, 1]} : vector<8x256xf32> to vector<8x64xf32>
    %42 = math.tanh %41 : vector<8x64xf32>
    %43 = vector.extract_strided_slice %40 {offsets = [0, 0], sizes = [8, 64], strides = [1, 1]} : vector<8x192xf32> to vector<8x64xf32>
    %44 = vector.extract_strided_slice %40 {offsets = [0, 64], sizes = [8, 64], strides = [1, 1]} : vector<8x192xf32> to vector<8x64xf32>
    %45 = vector.extract_strided_slice %40 {offsets = [0, 128], sizes = [8, 64], strides = [1, 1]} : vector<8x192xf32> to vector<8x64xf32>
    %46 = arith.mulf %44, %27 : vector<8x64xf32>
    %47 = arith.mulf %43, %42 : vector<8x64xf32>
    %48 = arith.addf %46, %47 : vector<8x64xf32>
    %49 = math.tanh %48 : vector<8x64xf32>
    %50 = arith.mulf %45, %49 : vector<8x64xf32>
    %c8_20 = arith.constant 8 : index
    %c0_21 = arith.constant 0 : index
    %51 = vector.load %arg11[%c8_20, %c0_21] : memref<80x64xf32, #tpu.memory_space<vmem>>, vector<8x64xf32>
    tpu.vector_store %arg11[%c8_20, %c0_21], %50 {strides = array<i32>} : memref<80x64xf32, #tpu.memory_space<vmem>>, vector<8x64xf32>,
    %52 = arith.truncf %50 : vector<8x64xf32> to vector<8x64xbf16>
    %cst_22 = arith.constant dense<0.000000e+00> : vector<8x256xf32>
    %53 = tpu.matmul %52, %7, %cst_22 {dimension_numbers = #tpu.dot_dimension_numbers<[1], [0], [0], [1], [0, 0, 1, 1], [], []>} : vector<8x64xbf16>, vector<64x256xbf16>, vector<8x256xf32> -> vector<8x256xf32>
    %c16 = arith.constant 16 : index
    %c0_23 = arith.constant 0 : index
    %54 = vector.load %arg10[%c16, %c0_23] : memref<80x256xf32, #tpu.memory_space<vmem>>, vector<8x256xf32>
    %55 = arith.addf %54, %53 : vector<8x256xf32>
    %56 = vector.extract_strided_slice %55 {offsets = [0, 0], sizes = [8, 192], strides = [1, 1]} : vector<8x256xf32> to vector<8x192xf32>
    %57 = arith.negf %56 : vector<8x192xf32>
    %58 = math.exp %57 : vector<8x192xf32>
    %cst_24 = arith.constant 1.000000e+00 : f32
    %59 = vector.broadcast %cst_24 : f32 to vector<8x192xf32>
    %60 = arith.addf %59, %58 : vector<8x192xf32>
    %61 = arith.divf %59, %60 : vector<8x192xf32>
    %62 = vector.extract_strided_slice %55 {offsets = [0, 192], sizes = [8, 64], strides = [1, 1]} : vector<8x256xf32> to vector<8x64xf32>
    %63 = math.tanh %62 : vector<8x64xf32>
    %64 = vector.extract_strided_slice %61 {offsets = [0, 0], sizes = [8, 64], strides = [1, 1]} : vector<8x192xf32> to vector<8x64xf32>
    %65 = vector.extract_strided_slice %61 {offsets = [0, 64], sizes = [8, 64], strides = [1, 1]} : vector<8x192xf32> to vector<8x64xf32>
    %66 = vector.extract_strided_slice %61 {offsets = [0, 128], sizes = [8, 64], strides = [1, 1]} : vector<8x192xf32> to vector<8x64xf32>
    %67 = arith.mulf %65, %48 : vector<8x64xf32>
    %68 = arith.mulf %64, %63 : vector<8x64xf32>
    %69 = arith.addf %67, %68 : vector<8x64xf32>
    %70 = math.tanh %69 : vector<8x64xf32>
    %71 = arith.mulf %66, %70 : vector<8x64xf32>
    %c16_25 = arith.constant 16 : index
    %c0_26 = arith.constant 0 : index
    %72 = vector.load %arg11[%c16_25, %c0_26] : memref<80x64xf32, #tpu.memory_space<vmem>>, vector<8x64xf32>
    tpu.vector_store %arg11[%c16_25, %c0_26], %71 {strides = array<i32>} : memref<80x64xf32, #tpu.memory_space<vmem>>, vector<8x64xf32>,
    %73 = arith.truncf %71 : vector<8x64xf32> to vector<8x64xbf16>
    %cst_27 = arith.constant dense<0.000000e+00> : vector<8x256xf32>
    %74 = tpu.matmul %73, %7, %cst_27 {dimension_numbers = #tpu.dot_dimension_numbers<[1], [0], [0], [1], [0, 0, 1, 1], [], []>} : vector<8x64xbf16>, vector<64x256xbf16>, vector<8x256xf32> -> vector<8x256xf32>
    %c24 = arith.constant 24 : index
    %c0_28 = arith.constant 0 : index
    %75 = vector.load %arg10[%c24, %c0_28] : memref<80x256xf32, #tpu.memory_space<vmem>>, vector<8x256xf32>
    %76 = arith.addf %75, %74 : vector<8x256xf32>
    %77 = vector.extract_strided_slice %76 {offsets = [0, 0], sizes = [8, 192], strides = [1, 1]} : vector<8x256xf32> to vector<8x192xf32>
    %78 = arith.negf %77 : vector<8x192xf32>
    %79 = math.exp %78 : vector<8x192xf32>
    %cst_29 = arith.constant 1.000000e+00 : f32
    %80 = vector.broadcast %cst_29 : f32 to vector<8x192xf32>
    %81 = arith.addf %80, %79 : vector<8x192xf32>
    %82 = arith.divf %80, %81 : vector<8x192xf32>
    %83 = vector.extract_strided_slice %76 {offsets = [0, 192], sizes = [8, 64], strides = [1, 1]} : vector<8x256xf32> to vector<8x64xf32>
    %84 = math.tanh %83 : vector<8x64xf32>
    %85 = vector.extract_strided_slice %82 {offsets = [0, 0], sizes = [8, 64], strides = [1, 1]} : vector<8x192xf32> to vector<8x64xf32>
    %86 = vector.extract_strided_slice %82 {offsets = [0, 64], sizes = [8, 64], strides = [1, 1]} : vector<8x192xf32> to vector<8x64xf32>
    %87 = vector.extract_strided_slice %82 {offsets = [0, 128], sizes = [8, 64], strides = [1, 1]} : vector<8x192xf32> to vector<8x64xf32>
    %88 = arith.mulf %86, %69 : vector<8x64xf32>
    %89 = arith.mulf %85, %84 : vector<8x64xf32>
    %90 = arith.addf %88, %89 : vector<8x64xf32>
    %91 = math.tanh %90 : vector<8x64xf32>
    %92 = arith.mulf %87, %91 : vector<8x64xf32>
    %c24_30 = arith.constant 24 : index
    %c0_31 = arith.constant 0 : index
    %93 = vector.load %arg11[%c24_30, %c0_31] : memref<80x64xf32, #tpu.memory_space<vmem>>, vector<8x64xf32>
    tpu.vector_store %arg11[%c24_30, %c0_31], %92 {strides = array<i32>} : memref<80x64xf32, #tpu.memory_space<vmem>>, vector<8x64xf32>,
    %94 = arith.truncf %92 : vector<8x64xf32> to vector<8x64xbf16>
    %cst_32 = arith.constant dense<0.000000e+00> : vector<8x256xf32>
    %95 = tpu.matmul %94, %7, %cst_32 {dimension_numbers = #tpu.dot_dimension_numbers<[1], [0], [0], [1], [0, 0, 1, 1], [], []>} : vector<8x64xbf16>, vector<64x256xbf16>, vector<8x256xf32> -> vector<8x256xf32>
    %c32 = arith.constant 32 : index
    %c0_33 = arith.constant 0 : index
    %96 = vector.load %arg10[%c32, %c0_33] : memref<80x256xf32, #tpu.memory_space<vmem>>, vector<8x256xf32>
    %97 = arith.addf %96, %95 : vector<8x256xf32>
    %98 = vector.extract_strided_slice %97 {offsets = [0, 0], sizes = [8, 192], strides = [1, 1]} : vector<8x256xf32> to vector<8x192xf32>
    %99 = arith.negf %98 : vector<8x192xf32>
    %100 = math.exp %99 : vector<8x192xf32>
    %cst_34 = arith.constant 1.000000e+00 : f32
    %101 = vector.broadcast %cst_34 : f32 to vector<8x192xf32>
    %102 = arith.addf %101, %100 : vector<8x192xf32>
    %103 = arith.divf %101, %102 : vector<8x192xf32>
    %104 = vector.extract_strided_slice %97 {offsets = [0, 192], sizes = [8, 64], strides = [1, 1]} : vector<8x256xf32> to vector<8x64xf32>
    %105 = math.tanh %104 : vector<8x64xf32>
    %106 = vector.extract_strided_slice %103 {offsets = [0, 0], sizes = [8, 64], strides = [1, 1]} : vector<8x192xf32> to vector<8x64xf32>
    %107 = vector.extract_strided_slice %103 {offsets = [0, 64], sizes = [8, 64], strides = [1, 1]} : vector<8x192xf32> to vector<8x64xf32>
    %108 = vector.extract_strided_slice %103 {offsets = [0, 128], sizes = [8, 64], strides = [1, 1]} : vector<8x192xf32> to vector<8x64xf32>
    %109 = arith.mulf %107, %90 : vector<8x64xf32>
    %110 = arith.mulf %106, %105 : vector<8x64xf32>
    %111 = arith.addf %109, %110 : vector<8x64xf32>
    %112 = math.tanh %111 : vector<8x64xf32>
    %113 = arith.mulf %108, %112 : vector<8x64xf32>
    %c32_35 = arith.constant 32 : index
    %c0_36 = arith.constant 0 : index
    %114 = vector.load %arg11[%c32_35, %c0_36] : memref<80x64xf32, #tpu.memory_space<vmem>>, vector<8x64xf32>
    tpu.vector_store %arg11[%c32_35, %c0_36], %113 {strides = array<i32>} : memref<80x64xf32, #tpu.memory_space<vmem>>, vector<8x64xf32>,
    %115 = arith.truncf %113 : vector<8x64xf32> to vector<8x64xbf16>
    %cst_37 = arith.constant dense<0.000000e+00> : vector<8x256xf32>
    %116 = tpu.matmul %115, %7, %cst_37 {dimension_numbers = #tpu.dot_dimension_numbers<[1], [0], [0], [1], [0, 0, 1, 1], [], []>} : vector<8x64xbf16>, vector<64x256xbf16>, vector<8x256xf32> -> vector<8x256xf32>
    %c40 = arith.constant 40 : index
    %c0_38 = arith.constant 0 : index
    %117 = vector.load %arg10[%c40, %c0_38] : memref<80x256xf32, #tpu.memory_space<vmem>>, vector<8x256xf32>
    %118 = arith.addf %117, %116 : vector<8x256xf32>
    %119 = vector.extract_strided_slice %118 {offsets = [0, 0], sizes = [8, 192], strides = [1, 1]} : vector<8x256xf32> to vector<8x192xf32>
    %120 = arith.negf %119 : vector<8x192xf32>
    %121 = math.exp %120 : vector<8x192xf32>
    %cst_39 = arith.constant 1.000000e+00 : f32
    %122 = vector.broadcast %cst_39 : f32 to vector<8x192xf32>
    %123 = arith.addf %122, %121 : vector<8x192xf32>
    %124 = arith.divf %122, %123 : vector<8x192xf32>
    %125 = vector.extract_strided_slice %118 {offsets = [0, 192], sizes = [8, 64], strides = [1, 1]} : vector<8x256xf32> to vector<8x64xf32>
    %126 = math.tanh %125 : vector<8x64xf32>
    %127 = vector.extract_strided_slice %124 {offsets = [0, 0], sizes = [8, 64], strides = [1, 1]} : vector<8x192xf32> to vector<8x64xf32>
    %128 = vector.extract_strided_slice %124 {offsets = [0, 64], sizes = [8, 64], strides = [1, 1]} : vector<8x192xf32> to vector<8x64xf32>
    %129 = vector.extract_strided_slice %124 {offsets = [0, 128], sizes = [8, 64], strides = [1, 1]} : vector<8x192xf32> to vector<8x64xf32>
    %130 = arith.mulf %128, %111 : vector<8x64xf32>
    %131 = arith.mulf %127, %126 : vector<8x64xf32>
    %132 = arith.addf %130, %131 : vector<8x64xf32>
    %133 = math.tanh %132 : vector<8x64xf32>
    %134 = arith.mulf %129, %133 : vector<8x64xf32>
    %c40_40 = arith.constant 40 : index
    %c0_41 = arith.constant 0 : index
    %135 = vector.load %arg11[%c40_40, %c0_41] : memref<80x64xf32, #tpu.memory_space<vmem>>, vector<8x64xf32>
    tpu.vector_store %arg11[%c40_40, %c0_41], %134 {strides = array<i32>} : memref<80x64xf32, #tpu.memory_space<vmem>>, vector<8x64xf32>,
    %136 = arith.truncf %134 : vector<8x64xf32> to vector<8x64xbf16>
    %cst_42 = arith.constant dense<0.000000e+00> : vector<8x256xf32>
    %137 = tpu.matmul %136, %7, %cst_42 {dimension_numbers = #tpu.dot_dimension_numbers<[1], [0], [0], [1], [0, 0, 1, 1], [], []>} : vector<8x64xbf16>, vector<64x256xbf16>, vector<8x256xf32> -> vector<8x256xf32>
    %c48 = arith.constant 48 : index
    %c0_43 = arith.constant 0 : index
    %138 = vector.load %arg10[%c48, %c0_43] : memref<80x256xf32, #tpu.memory_space<vmem>>, vector<8x256xf32>
    %139 = arith.addf %138, %137 : vector<8x256xf32>
    %140 = vector.extract_strided_slice %139 {offsets = [0, 0], sizes = [8, 192], strides = [1, 1]} : vector<8x256xf32> to vector<8x192xf32>
    %141 = arith.negf %140 : vector<8x192xf32>
    %142 = math.exp %141 : vector<8x192xf32>
    %cst_44 = arith.constant 1.000000e+00 : f32
    %143 = vector.broadcast %cst_44 : f32 to vector<8x192xf32>
    %144 = arith.addf %143, %142 : vector<8x192xf32>
    %145 = arith.divf %143, %144 : vector<8x192xf32>
    %146 = vector.extract_strided_slice %139 {offsets = [0, 192], sizes = [8, 64], strides = [1, 1]} : vector<8x256xf32> to vector<8x64xf32>
    %147 = math.tanh %146 : vector<8x64xf32>
    %148 = vector.extract_strided_slice %145 {offsets = [0, 0], sizes = [8, 64], strides = [1, 1]} : vector<8x192xf32> to vector<8x64xf32>
    %149 = vector.extract_strided_slice %145 {offsets = [0, 64], sizes = [8, 64], strides = [1, 1]} : vector<8x192xf32> to vector<8x64xf32>
    %150 = vector.extract_strided_slice %145 {offsets = [0, 128], sizes = [8, 64], strides = [1, 1]} : vector<8x192xf32> to vector<8x64xf32>
    %151 = arith.mulf %149, %132 : vector<8x64xf32>
    %152 = arith.mulf %148, %147 : vector<8x64xf32>
    %153 = arith.addf %151, %152 : vector<8x64xf32>
    %154 = math.tanh %153 : vector<8x64xf32>
    %155 = arith.mulf %150, %154 : vector<8x64xf32>
    %c48_45 = arith.constant 48 : index
    %c0_46 = arith.constant 0 : index
    %156 = vector.load %arg11[%c48_45, %c0_46] : memref<80x64xf32, #tpu.memory_space<vmem>>, vector<8x64xf32>
    tpu.vector_store %arg11[%c48_45, %c0_46], %155 {strides = array<i32>} : memref<80x64xf32, #tpu.memory_space<vmem>>, vector<8x64xf32>,
    %157 = arith.truncf %155 : vector<8x64xf32> to vector<8x64xbf16>
    %cst_47 = arith.constant dense<0.000000e+00> : vector<8x256xf32>
    %158 = tpu.matmul %157, %7, %cst_47 {dimension_numbers = #tpu.dot_dimension_numbers<[1], [0], [0], [1], [0, 0, 1, 1], [], []>} : vector<8x64xbf16>, vector<64x256xbf16>, vector<8x256xf32> -> vector<8x256xf32>
    %c56 = arith.constant 56 : index
    %c0_48 = arith.constant 0 : index
    %159 = vector.load %arg10[%c56, %c0_48] : memref<80x256xf32, #tpu.memory_space<vmem>>, vector<8x256xf32>
    %160 = arith.addf %159, %158 : vector<8x256xf32>
    %161 = vector.extract_strided_slice %160 {offsets = [0, 0], sizes = [8, 192], strides = [1, 1]} : vector<8x256xf32> to vector<8x192xf32>
    %162 = arith.negf %161 : vector<8x192xf32>
    %163 = math.exp %162 : vector<8x192xf32>
    %cst_49 = arith.constant 1.000000e+00 : f32
    %164 = vector.broadcast %cst_49 : f32 to vector<8x192xf32>
    %165 = arith.addf %164, %163 : vector<8x192xf32>
    %166 = arith.divf %164, %165 : vector<8x192xf32>
    %167 = vector.extract_strided_slice %160 {offsets = [0, 192], sizes = [8, 64], strides = [1, 1]} : vector<8x256xf32> to vector<8x64xf32>
    %168 = math.tanh %167 : vector<8x64xf32>
    %169 = vector.extract_strided_slice %166 {offsets = [0, 0], sizes = [8, 64], strides = [1, 1]} : vector<8x192xf32> to vector<8x64xf32>
    %170 = vector.extract_strided_slice %166 {offsets = [0, 64], sizes = [8, 64], strides = [1, 1]} : vector<8x192xf32> to vector<8x64xf32>
    %171 = vector.extract_strided_slice %166 {offsets = [0, 128], sizes = [8, 64], strides = [1, 1]} : vector<8x192xf32> to vector<8x64xf32>
    %172 = arith.mulf %170, %153 : vector<8x64xf32>
    %173 = arith.mulf %169, %168 : vector<8x64xf32>
    %174 = arith.addf %172, %173 : vector<8x64xf32>
    %175 = math.tanh %174 : vector<8x64xf32>
    %176 = arith.mulf %171, %175 : vector<8x64xf32>
    %c56_50 = arith.constant 56 : index
    %c0_51 = arith.constant 0 : index
    %177 = vector.load %arg11[%c56_50, %c0_51] : memref<80x64xf32, #tpu.memory_space<vmem>>, vector<8x64xf32>
    tpu.vector_store %arg11[%c56_50, %c0_51], %176 {strides = array<i32>} : memref<80x64xf32, #tpu.memory_space<vmem>>, vector<8x64xf32>,
    %178 = arith.truncf %176 : vector<8x64xf32> to vector<8x64xbf16>
    %cst_52 = arith.constant dense<0.000000e+00> : vector<8x256xf32>
    %179 = tpu.matmul %178, %7, %cst_52 {dimension_numbers = #tpu.dot_dimension_numbers<[1], [0], [0], [1], [0, 0, 1, 1], [], []>} : vector<8x64xbf16>, vector<64x256xbf16>, vector<8x256xf32> -> vector<8x256xf32>
    %c64 = arith.constant 64 : index
    %c0_53 = arith.constant 0 : index
    %180 = vector.load %arg10[%c64, %c0_53] : memref<80x256xf32, #tpu.memory_space<vmem>>, vector<8x256xf32>
    %181 = arith.addf %180, %179 : vector<8x256xf32>
    %182 = vector.extract_strided_slice %181 {offsets = [0, 0], sizes = [8, 192], strides = [1, 1]} : vector<8x256xf32> to vector<8x192xf32>
    %183 = arith.negf %182 : vector<8x192xf32>
    %184 = math.exp %183 : vector<8x192xf32>
    %cst_54 = arith.constant 1.000000e+00 : f32
    %185 = vector.broadcast %cst_54 : f32 to vector<8x192xf32>
    %186 = arith.addf %185, %184 : vector<8x192xf32>
    %187 = arith.divf %185, %186 : vector<8x192xf32>
    %188 = vector.extract_strided_slice %181 {offsets = [0, 192], sizes = [8, 64], strides = [1, 1]} : vector<8x256xf32> to vector<8x64xf32>
    %189 = math.tanh %188 : vector<8x64xf32>
    %190 = vector.extract_strided_slice %187 {offsets = [0, 0], sizes = [8, 64], strides = [1, 1]} : vector<8x192xf32> to vector<8x64xf32>
    %191 = vector.extract_strided_slice %187 {offsets = [0, 64], sizes = [8, 64], strides = [1, 1]} : vector<8x192xf32> to vector<8x64xf32>
    %192 = vector.extract_strided_slice %187 {offsets = [0, 128], sizes = [8, 64], strides = [1, 1]} : vector<8x192xf32> to vector<8x64xf32>
    %193 = arith.mulf %191, %174 : vector<8x64xf32>
    %194 = arith.mulf %190, %189 : vector<8x64xf32>
    %195 = arith.addf %193, %194 : vector<8x64xf32>
    %196 = math.tanh %195 : vector<8x64xf32>
    %197 = arith.mulf %192, %196 : vector<8x64xf32>
    %c64_55 = arith.constant 64 : index
    %c0_56 = arith.constant 0 : index
    %198 = vector.load %arg11[%c64_55, %c0_56] : memref<80x64xf32, #tpu.memory_space<vmem>>, vector<8x64xf32>
    tpu.vector_store %arg11[%c64_55, %c0_56], %197 {strides = array<i32>} : memref<80x64xf32, #tpu.memory_space<vmem>>, vector<8x64xf32>,
    %199 = arith.truncf %197 : vector<8x64xf32> to vector<8x64xbf16>
    %cst_57 = arith.constant dense<0.000000e+00> : vector<8x256xf32>
    %200 = tpu.matmul %199, %7, %cst_57 {dimension_numbers = #tpu.dot_dimension_numbers<[1], [0], [0], [1], [0, 0, 1, 1], [], []>} : vector<8x64xbf16>, vector<64x256xbf16>, vector<8x256xf32> -> vector<8x256xf32>
    %c72 = arith.constant 72 : index
    %c0_58 = arith.constant 0 : index
    %201 = vector.load %arg10[%c72, %c0_58] : memref<80x256xf32, #tpu.memory_space<vmem>>, vector<8x256xf32>
    %202 = arith.addf %201, %200 : vector<8x256xf32>
    %203 = vector.extract_strided_slice %202 {offsets = [0, 0], sizes = [8, 192], strides = [1, 1]} : vector<8x256xf32> to vector<8x192xf32>
    %204 = arith.negf %203 : vector<8x192xf32>
    %205 = math.exp %204 : vector<8x192xf32>
    %cst_59 = arith.constant 1.000000e+00 : f32
    %206 = vector.broadcast %cst_59 : f32 to vector<8x192xf32>
    %207 = arith.addf %206, %205 : vector<8x192xf32>
    %208 = arith.divf %206, %207 : vector<8x192xf32>
    %209 = vector.extract_strided_slice %202 {offsets = [0, 192], sizes = [8, 64], strides = [1, 1]} : vector<8x256xf32> to vector<8x64xf32>
    %210 = math.tanh %209 : vector<8x64xf32>
    %211 = vector.extract_strided_slice %208 {offsets = [0, 0], sizes = [8, 64], strides = [1, 1]} : vector<8x192xf32> to vector<8x64xf32>
    %212 = vector.extract_strided_slice %208 {offsets = [0, 64], sizes = [8, 64], strides = [1, 1]} : vector<8x192xf32> to vector<8x64xf32>
    %213 = vector.extract_strided_slice %208 {offsets = [0, 128], sizes = [8, 64], strides = [1, 1]} : vector<8x192xf32> to vector<8x64xf32>
    %214 = arith.mulf %212, %195 : vector<8x64xf32>
    %215 = arith.mulf %211, %210 : vector<8x64xf32>
    %216 = arith.addf %214, %215 : vector<8x64xf32>
    %217 = math.tanh %216 : vector<8x64xf32>
    %218 = arith.mulf %213, %217 : vector<8x64xf32>
    %c72_60 = arith.constant 72 : index
    %c0_61 = arith.constant 0 : index
    %219 = vector.load %arg11[%c72_60, %c0_61] : memref<80x64xf32, #tpu.memory_space<vmem>>, vector<8x64xf32>
    tpu.vector_store %arg11[%c72_60, %c0_61], %218 {strides = array<i32>} : memref<80x64xf32, #tpu.memory_space<vmem>>, vector<8x64xf32>,
    %c0_62 = arith.constant 0 : index
    %c0_63 = arith.constant 0 : index
    %220 = vector.load %arg11[%c0_62, %c0_63] : memref<80x64xf32, #tpu.memory_space<vmem>>, vector<80x64xf32>
    %221 = arith.truncf %220 : vector<80x64xf32> to vector<80x64xbf16>
    %c0_64 = arith.constant 0 : index
    %c0_65 = arith.constant 0 : index
    %222 = vector.load %arg4[%c0_64, %c0_65] : memref<64x256xbf16, #tpu.memory_space<vmem>>, vector<64x256xbf16>
    %cst_66 = arith.constant dense<0.000000e+00> : vector<80x256xf32>
    %223 = tpu.matmul %221, %222, %cst_66 {dimension_numbers = #tpu.dot_dimension_numbers<[1], [0], [0], [1], [0, 0, 1, 1], [], []>} : vector<80x64xbf16>, vector<64x256xbf16>, vector<80x256xf32> -> vector<80x256xf32>
    %c0_67 = arith.constant 0 : index
    %c0_68 = arith.constant 0 : index
    %224 = vector.load %arg6[%c0_67, %c0_68] : memref<1x256xf32, #tpu.memory_space<vmem>>, vector<1x256xf32>
    %225 = vector.broadcast %224 : vector<1x256xf32> to vector<80x256xf32>
    %226 = arith.addf %223, %225 : vector<80x256xf32>
    %c0_69 = arith.constant 0 : index
    %c0_70 = arith.constant 0 : index
    %227 = vector.load %arg10[%c0_69, %c0_70] : memref<80x256xf32, #tpu.memory_space<vmem>>, vector<80x256xf32>
    tpu.vector_store %arg10[%c0_69, %c0_70], %226 {strides = array<i32>} : memref<80x256xf32, #tpu.memory_space<vmem>>, vector<80x256xf32>,
    %c0_71 = arith.constant 0 : index
    %c0_72 = arith.constant 0 : index
    %228 = vector.load %arg5[%c0_71, %c0_72] : memref<64x256xbf16, #tpu.memory_space<vmem>>, vector<64x256xbf16>
    %cst_73 = arith.constant 0.000000e+00 : f32
    %229 = vector.broadcast %cst_73 : f32 to vector<8x64xf32>
    %cst_74 = arith.constant 0.000000e+00 : f32
    %230 = vector.broadcast %cst_74 : f32 to vector<8x64xf32>
    %231 = arith.truncf %229 : vector<8x64xf32> to vector<8x64xbf16>
    %cst_75 = arith.constant dense<0.000000e+00> : vector<8x256xf32>
    %232 = tpu.matmul %231, %228, %cst_75 {dimension_numbers = #tpu.dot_dimension_numbers<[1], [0], [0], [1], [0, 0, 1, 1], [], []>} : vector<8x64xbf16>, vector<64x256xbf16>, vector<8x256xf32> -> vector<8x256xf32>
    %c0_76 = arith.constant 0 : index
    %c0_77 = arith.constant 0 : index
    %233 = vector.load %arg10[%c0_76, %c0_77] : memref<80x256xf32, #tpu.memory_space<vmem>>, vector<8x256xf32>
    %234 = arith.addf %233, %232 : vector<8x256xf32>
    %235 = vector.extract_strided_slice %234 {offsets = [0, 0], sizes = [8, 192], strides = [1, 1]} : vector<8x256xf32> to vector<8x192xf32>
    %236 = arith.negf %235 : vector<8x192xf32>
    %237 = math.exp %236 : vector<8x192xf32>
    %cst_78 = arith.constant 1.000000e+00 : f32
    %238 = vector.broadcast %cst_78 : f32 to vector<8x192xf32>
    %239 = arith.addf %238, %237 : vector<8x192xf32>
    %240 = arith.divf %238, %239 : vector<8x192xf32>
    %241 = vector.extract_strided_slice %234 {offsets = [0, 192], sizes = [8, 64], strides = [1, 1]} : vector<8x256xf32> to vector<8x64xf32>
    %242 = math.tanh %241 : vector<8x64xf32>
    %243 = vector.extract_strided_slice %240 {offsets = [0, 0], sizes = [8, 64], strides = [1, 1]} : vector<8x192xf32> to vector<8x64xf32>
    %244 = vector.extract_strided_slice %240 {offsets = [0, 64], sizes = [8, 64], strides = [1, 1]} : vector<8x192xf32> to vector<8x64xf32>
    %245 = vector.extract_strided_slice %240 {offsets = [0, 128], sizes = [8, 64], strides = [1, 1]} : vector<8x192xf32> to vector<8x64xf32>
    %246 = arith.mulf %244, %230 : vector<8x64xf32>
    %247 = arith.mulf %243, %242 : vector<8x64xf32>
    %248 = arith.addf %246, %247 : vector<8x64xf32>
    %249 = math.tanh %248 : vector<8x64xf32>
    %250 = arith.mulf %245, %249 : vector<8x64xf32>
    %251 = arith.truncf %250 : vector<8x64xf32> to vector<8x64xbf16>
    %cst_79 = arith.constant dense<0.000000e+00> : vector<8x256xf32>
    %252 = tpu.matmul %251, %228, %cst_79 {dimension_numbers = #tpu.dot_dimension_numbers<[1], [0], [0], [1], [0, 0, 1, 1], [], []>} : vector<8x64xbf16>, vector<64x256xbf16>, vector<8x256xf32> -> vector<8x256xf32>
    %c8_80 = arith.constant 8 : index
    %c0_81 = arith.constant 0 : index
    %253 = vector.load %arg10[%c8_80, %c0_81] : memref<80x256xf32, #tpu.memory_space<vmem>>, vector<8x256xf32>
    %254 = arith.addf %253, %252 : vector<8x256xf32>
    %255 = vector.extract_strided_slice %254 {offsets = [0, 0], sizes = [8, 192], strides = [1, 1]} : vector<8x256xf32> to vector<8x192xf32>
    %256 = arith.negf %255 : vector<8x192xf32>
    %257 = math.exp %256 : vector<8x192xf32>
    %cst_82 = arith.constant 1.000000e+00 : f32
    %258 = vector.broadcast %cst_82 : f32 to vector<8x192xf32>
    %259 = arith.addf %258, %257 : vector<8x192xf32>
    %260 = arith.divf %258, %259 : vector<8x192xf32>
    %261 = vector.extract_strided_slice %254 {offsets = [0, 192], sizes = [8, 64], strides = [1, 1]} : vector<8x256xf32> to vector<8x64xf32>
    %262 = math.tanh %261 : vector<8x64xf32>
    %263 = vector.extract_strided_slice %260 {offsets = [0, 0], sizes = [8, 64], strides = [1, 1]} : vector<8x192xf32> to vector<8x64xf32>
    %264 = vector.extract_strided_slice %260 {offsets = [0, 64], sizes = [8, 64], strides = [1, 1]} : vector<8x192xf32> to vector<8x64xf32>
    %265 = vector.extract_strided_slice %260 {offsets = [0, 128], sizes = [8, 64], strides = [1, 1]} : vector<8x192xf32> to vector<8x64xf32>
    %266 = arith.mulf %264, %248 : vector<8x64xf32>
    %267 = arith.mulf %263, %262 : vector<8x64xf32>
    %268 = arith.addf %266, %267 : vector<8x64xf32>
    %269 = math.tanh %268 : vector<8x64xf32>
    %270 = arith.mulf %265, %269 : vector<8x64xf32>
    %271 = arith.truncf %270 : vector<8x64xf32> to vector<8x64xbf16>
    %cst_83 = arith.constant dense<0.000000e+00> : vector<8x256xf32>
    %272 = tpu.matmul %271, %228, %cst_83 {dimension_numbers = #tpu.dot_dimension_numbers<[1], [0], [0], [1], [0, 0, 1, 1], [], []>} : vector<8x64xbf16>, vector<64x256xbf16>, vector<8x256xf32> -> vector<8x256xf32>
    %c16_84 = arith.constant 16 : index
    %c0_85 = arith.constant 0 : index
    %273 = vector.load %arg10[%c16_84, %c0_85] : memref<80x256xf32, #tpu.memory_space<vmem>>, vector<8x256xf32>
    %274 = arith.addf %273, %272 : vector<8x256xf32>
    %275 = vector.extract_strided_slice %274 {offsets = [0, 0], sizes = [8, 192], strides = [1, 1]} : vector<8x256xf32> to vector<8x192xf32>
    %276 = arith.negf %275 : vector<8x192xf32>
    %277 = math.exp %276 : vector<8x192xf32>
    %cst_86 = arith.constant 1.000000e+00 : f32
    %278 = vector.broadcast %cst_86 : f32 to vector<8x192xf32>
    %279 = arith.addf %278, %277 : vector<8x192xf32>
    %280 = arith.divf %278, %279 : vector<8x192xf32>
    %281 = vector.extract_strided_slice %274 {offsets = [0, 192], sizes = [8, 64], strides = [1, 1]} : vector<8x256xf32> to vector<8x64xf32>
    %282 = math.tanh %281 : vector<8x64xf32>
    %283 = vector.extract_strided_slice %280 {offsets = [0, 0], sizes = [8, 64], strides = [1, 1]} : vector<8x192xf32> to vector<8x64xf32>
    %284 = vector.extract_strided_slice %280 {offsets = [0, 64], sizes = [8, 64], strides = [1, 1]} : vector<8x192xf32> to vector<8x64xf32>
    %285 = vector.extract_strided_slice %280 {offsets = [0, 128], sizes = [8, 64], strides = [1, 1]} : vector<8x192xf32> to vector<8x64xf32>
    %286 = arith.mulf %284, %268 : vector<8x64xf32>
    %287 = arith.mulf %283, %282 : vector<8x64xf32>
    %288 = arith.addf %286, %287 : vector<8x64xf32>
    %289 = math.tanh %288 : vector<8x64xf32>
    %290 = arith.mulf %285, %289 : vector<8x64xf32>
    %291 = arith.truncf %290 : vector<8x64xf32> to vector<8x64xbf16>
    %cst_87 = arith.constant dense<0.000000e+00> : vector<8x256xf32>
    %292 = tpu.matmul %291, %228, %cst_87 {dimension_numbers = #tpu.dot_dimension_numbers<[1], [0], [0], [1], [0, 0, 1, 1], [], []>} : vector<8x64xbf16>, vector<64x256xbf16>, vector<8x256xf32> -> vector<8x256xf32>
    %c24_88 = arith.constant 24 : index
    %c0_89 = arith.constant 0 : index
    %293 = vector.load %arg10[%c24_88, %c0_89] : memref<80x256xf32, #tpu.memory_space<vmem>>, vector<8x256xf32>
    %294 = arith.addf %293, %292 : vector<8x256xf32>
    %295 = vector.extract_strided_slice %294 {offsets = [0, 0], sizes = [8, 192], strides = [1, 1]} : vector<8x256xf32> to vector<8x192xf32>
    %296 = arith.negf %295 : vector<8x192xf32>
    %297 = math.exp %296 : vector<8x192xf32>
    %cst_90 = arith.constant 1.000000e+00 : f32
    %298 = vector.broadcast %cst_90 : f32 to vector<8x192xf32>
    %299 = arith.addf %298, %297 : vector<8x192xf32>
    %300 = arith.divf %298, %299 : vector<8x192xf32>
    %301 = vector.extract_strided_slice %294 {offsets = [0, 192], sizes = [8, 64], strides = [1, 1]} : vector<8x256xf32> to vector<8x64xf32>
    %302 = math.tanh %301 : vector<8x64xf32>
    %303 = vector.extract_strided_slice %300 {offsets = [0, 0], sizes = [8, 64], strides = [1, 1]} : vector<8x192xf32> to vector<8x64xf32>
    %304 = vector.extract_strided_slice %300 {offsets = [0, 64], sizes = [8, 64], strides = [1, 1]} : vector<8x192xf32> to vector<8x64xf32>
    %305 = vector.extract_strided_slice %300 {offsets = [0, 128], sizes = [8, 64], strides = [1, 1]} : vector<8x192xf32> to vector<8x64xf32>
    %306 = arith.mulf %304, %288 : vector<8x64xf32>
    %307 = arith.mulf %303, %302 : vector<8x64xf32>
    %308 = arith.addf %306, %307 : vector<8x64xf32>
    %309 = math.tanh %308 : vector<8x64xf32>
    %310 = arith.mulf %305, %309 : vector<8x64xf32>
    %311 = arith.truncf %310 : vector<8x64xf32> to vector<8x64xbf16>
    %cst_91 = arith.constant dense<0.000000e+00> : vector<8x256xf32>
    %312 = tpu.matmul %311, %228, %cst_91 {dimension_numbers = #tpu.dot_dimension_numbers<[1], [0], [0], [1], [0, 0, 1, 1], [], []>} : vector<8x64xbf16>, vector<64x256xbf16>, vector<8x256xf32> -> vector<8x256xf32>
    %c32_92 = arith.constant 32 : index
    %c0_93 = arith.constant 0 : index
    %313 = vector.load %arg10[%c32_92, %c0_93] : memref<80x256xf32, #tpu.memory_space<vmem>>, vector<8x256xf32>
    %314 = arith.addf %313, %312 : vector<8x256xf32>
    %315 = vector.extract_strided_slice %314 {offsets = [0, 0], sizes = [8, 192], strides = [1, 1]} : vector<8x256xf32> to vector<8x192xf32>
    %316 = arith.negf %315 : vector<8x192xf32>
    %317 = math.exp %316 : vector<8x192xf32>
    %cst_94 = arith.constant 1.000000e+00 : f32
    %318 = vector.broadcast %cst_94 : f32 to vector<8x192xf32>
    %319 = arith.addf %318, %317 : vector<8x192xf32>
    %320 = arith.divf %318, %319 : vector<8x192xf32>
    %321 = vector.extract_strided_slice %314 {offsets = [0, 192], sizes = [8, 64], strides = [1, 1]} : vector<8x256xf32> to vector<8x64xf32>
    %322 = math.tanh %321 : vector<8x64xf32>
    %323 = vector.extract_strided_slice %320 {offsets = [0, 0], sizes = [8, 64], strides = [1, 1]} : vector<8x192xf32> to vector<8x64xf32>
    %324 = vector.extract_strided_slice %320 {offsets = [0, 64], sizes = [8, 64], strides = [1, 1]} : vector<8x192xf32> to vector<8x64xf32>
    %325 = vector.extract_strided_slice %320 {offsets = [0, 128], sizes = [8, 64], strides = [1, 1]} : vector<8x192xf32> to vector<8x64xf32>
    %326 = arith.mulf %324, %308 : vector<8x64xf32>
    %327 = arith.mulf %323, %322 : vector<8x64xf32>
    %328 = arith.addf %326, %327 : vector<8x64xf32>
    %329 = math.tanh %328 : vector<8x64xf32>
    %330 = arith.mulf %325, %329 : vector<8x64xf32>
    %331 = arith.truncf %330 : vector<8x64xf32> to vector<8x64xbf16>
    %cst_95 = arith.constant dense<0.000000e+00> : vector<8x256xf32>
    %332 = tpu.matmul %331, %228, %cst_95 {dimension_numbers = #tpu.dot_dimension_numbers<[1], [0], [0], [1], [0, 0, 1, 1], [], []>} : vector<8x64xbf16>, vector<64x256xbf16>, vector<8x256xf32> -> vector<8x256xf32>
    %c40_96 = arith.constant 40 : index
    %c0_97 = arith.constant 0 : index
    %333 = vector.load %arg10[%c40_96, %c0_97] : memref<80x256xf32, #tpu.memory_space<vmem>>, vector<8x256xf32>
    %334 = arith.addf %333, %332 : vector<8x256xf32>
    %335 = vector.extract_strided_slice %334 {offsets = [0, 0], sizes = [8, 192], strides = [1, 1]} : vector<8x256xf32> to vector<8x192xf32>
    %336 = arith.negf %335 : vector<8x192xf32>
    %337 = math.exp %336 : vector<8x192xf32>
    %cst_98 = arith.constant 1.000000e+00 : f32
    %338 = vector.broadcast %cst_98 : f32 to vector<8x192xf32>
    %339 = arith.addf %338, %337 : vector<8x192xf32>
    %340 = arith.divf %338, %339 : vector<8x192xf32>
    %341 = vector.extract_strided_slice %334 {offsets = [0, 192], sizes = [8, 64], strides = [1, 1]} : vector<8x256xf32> to vector<8x64xf32>
    %342 = math.tanh %341 : vector<8x64xf32>
    %343 = vector.extract_strided_slice %340 {offsets = [0, 0], sizes = [8, 64], strides = [1, 1]} : vector<8x192xf32> to vector<8x64xf32>
    %344 = vector.extract_strided_slice %340 {offsets = [0, 64], sizes = [8, 64], strides = [1, 1]} : vector<8x192xf32> to vector<8x64xf32>
    %345 = vector.extract_strided_slice %340 {offsets = [0, 128], sizes = [8, 64], strides = [1, 1]} : vector<8x192xf32> to vector<8x64xf32>
    %346 = arith.mulf %344, %328 : vector<8x64xf32>
    %347 = arith.mulf %343, %342 : vector<8x64xf32>
    %348 = arith.addf %346, %347 : vector<8x64xf32>
    %349 = math.tanh %348 : vector<8x64xf32>
    %350 = arith.mulf %345, %349 : vector<8x64xf32>
    %351 = arith.truncf %350 : vector<8x64xf32> to vector<8x64xbf16>
    %cst_99 = arith.constant dense<0.000000e+00> : vector<8x256xf32>
    %352 = tpu.matmul %351, %228, %cst_99 {dimension_numbers = #tpu.dot_dimension_numbers<[1], [0], [0], [1], [0, 0, 1, 1], [], []>} : vector<8x64xbf16>, vector<64x256xbf16>, vector<8x256xf32> -> vector<8x256xf32>
    %c48_100 = arith.constant 48 : index
    %c0_101 = arith.constant 0 : index
    %353 = vector.load %arg10[%c48_100, %c0_101] : memref<80x256xf32, #tpu.memory_space<vmem>>, vector<8x256xf32>
    %354 = arith.addf %353, %352 : vector<8x256xf32>
    %355 = vector.extract_strided_slice %354 {offsets = [0, 0], sizes = [8, 192], strides = [1, 1]} : vector<8x256xf32> to vector<8x192xf32>
    %356 = arith.negf %355 : vector<8x192xf32>
    %357 = math.exp %356 : vector<8x192xf32>
    %cst_102 = arith.constant 1.000000e+00 : f32
    %358 = vector.broadcast %cst_102 : f32 to vector<8x192xf32>
    %359 = arith.addf %358, %357 : vector<8x192xf32>
    %360 = arith.divf %358, %359 : vector<8x192xf32>
    %361 = vector.extract_strided_slice %354 {offsets = [0, 192], sizes = [8, 64], strides = [1, 1]} : vector<8x256xf32> to vector<8x64xf32>
    %362 = math.tanh %361 : vector<8x64xf32>
    %363 = vector.extract_strided_slice %360 {offsets = [0, 0], sizes = [8, 64], strides = [1, 1]} : vector<8x192xf32> to vector<8x64xf32>
    %364 = vector.extract_strided_slice %360 {offsets = [0, 64], sizes = [8, 64], strides = [1, 1]} : vector<8x192xf32> to vector<8x64xf32>
    %365 = vector.extract_strided_slice %360 {offsets = [0, 128], sizes = [8, 64], strides = [1, 1]} : vector<8x192xf32> to vector<8x64xf32>
    %366 = arith.mulf %364, %348 : vector<8x64xf32>
    %367 = arith.mulf %363, %362 : vector<8x64xf32>
    %368 = arith.addf %366, %367 : vector<8x64xf32>
    %369 = math.tanh %368 : vector<8x64xf32>
    %370 = arith.mulf %365, %369 : vector<8x64xf32>
    %371 = arith.truncf %370 : vector<8x64xf32> to vector<8x64xbf16>
    %cst_103 = arith.constant dense<0.000000e+00> : vector<8x256xf32>
    %372 = tpu.matmul %371, %228, %cst_103 {dimension_numbers = #tpu.dot_dimension_numbers<[1], [0], [0], [1], [0, 0, 1, 1], [], []>} : vector<8x64xbf16>, vector<64x256xbf16>, vector<8x256xf32> -> vector<8x256xf32>
    %c56_104 = arith.constant 56 : index
    %c0_105 = arith.constant 0 : index
    %373 = vector.load %arg10[%c56_104, %c0_105] : memref<80x256xf32, #tpu.memory_space<vmem>>, vector<8x256xf32>
    %374 = arith.addf %373, %372 : vector<8x256xf32>
    %375 = vector.extract_strided_slice %374 {offsets = [0, 0], sizes = [8, 192], strides = [1, 1]} : vector<8x256xf32> to vector<8x192xf32>
    %376 = arith.negf %375 : vector<8x192xf32>
    %377 = math.exp %376 : vector<8x192xf32>
    %cst_106 = arith.constant 1.000000e+00 : f32
    %378 = vector.broadcast %cst_106 : f32 to vector<8x192xf32>
    %379 = arith.addf %378, %377 : vector<8x192xf32>
    %380 = arith.divf %378, %379 : vector<8x192xf32>
    %381 = vector.extract_strided_slice %374 {offsets = [0, 192], sizes = [8, 64], strides = [1, 1]} : vector<8x256xf32> to vector<8x64xf32>
    %382 = math.tanh %381 : vector<8x64xf32>
    %383 = vector.extract_strided_slice %380 {offsets = [0, 0], sizes = [8, 64], strides = [1, 1]} : vector<8x192xf32> to vector<8x64xf32>
    %384 = vector.extract_strided_slice %380 {offsets = [0, 64], sizes = [8, 64], strides = [1, 1]} : vector<8x192xf32> to vector<8x64xf32>
    %385 = vector.extract_strided_slice %380 {offsets = [0, 128], sizes = [8, 64], strides = [1, 1]} : vector<8x192xf32> to vector<8x64xf32>
    %386 = arith.mulf %384, %368 : vector<8x64xf32>
    %387 = arith.mulf %383, %382 : vector<8x64xf32>
    %388 = arith.addf %386, %387 : vector<8x64xf32>
    %389 = math.tanh %388 : vector<8x64xf32>
    %390 = arith.mulf %385, %389 : vector<8x64xf32>
    %391 = arith.truncf %390 : vector<8x64xf32> to vector<8x64xbf16>
    %cst_107 = arith.constant dense<0.000000e+00> : vector<8x256xf32>
    %392 = tpu.matmul %391, %228, %cst_107 {dimension_numbers = #tpu.dot_dimension_numbers<[1], [0], [0], [1], [0, 0, 1, 1], [], []>} : vector<8x64xbf16>, vector<64x256xbf16>, vector<8x256xf32> -> vector<8x256xf32>
    %c64_108 = arith.constant 64 : index
    %c0_109 = arith.constant 0 : index
    %393 = vector.load %arg10[%c64_108, %c0_109] : memref<80x256xf32, #tpu.memory_space<vmem>>, vector<8x256xf32>
    %394 = arith.addf %393, %392 : vector<8x256xf32>
    %395 = vector.extract_strided_slice %394 {offsets = [0, 0], sizes = [8, 192], strides = [1, 1]} : vector<8x256xf32> to vector<8x192xf32>
    %396 = arith.negf %395 : vector<8x192xf32>
    %397 = math.exp %396 : vector<8x192xf32>
    %cst_110 = arith.constant 1.000000e+00 : f32
    %398 = vector.broadcast %cst_110 : f32 to vector<8x192xf32>
    %399 = arith.addf %398, %397 : vector<8x192xf32>
    %400 = arith.divf %398, %399 : vector<8x192xf32>
    %401 = vector.extract_strided_slice %394 {offsets = [0, 192], sizes = [8, 64], strides = [1, 1]} : vector<8x256xf32> to vector<8x64xf32>
    %402 = math.tanh %401 : vector<8x64xf32>
    %403 = vector.extract_strided_slice %400 {offsets = [0, 0], sizes = [8, 64], strides = [1, 1]} : vector<8x192xf32> to vector<8x64xf32>
    %404 = vector.extract_strided_slice %400 {offsets = [0, 64], sizes = [8, 64], strides = [1, 1]} : vector<8x192xf32> to vector<8x64xf32>
    %405 = vector.extract_strided_slice %400 {offsets = [0, 128], sizes = [8, 64], strides = [1, 1]} : vector<8x192xf32> to vector<8x64xf32>
    %406 = arith.mulf %404, %388 : vector<8x64xf32>
    %407 = arith.mulf %403, %402 : vector<8x64xf32>
    %408 = arith.addf %406, %407 : vector<8x64xf32>
    %409 = math.tanh %408 : vector<8x64xf32>
    %410 = arith.mulf %405, %409 : vector<8x64xf32>
    %411 = arith.truncf %410 : vector<8x64xf32> to vector<8x64xbf16>
    %cst_111 = arith.constant dense<0.000000e+00> : vector<8x256xf32>
    %412 = tpu.matmul %411, %228, %cst_111 {dimension_numbers = #tpu.dot_dimension_numbers<[1], [0], [0], [1], [0, 0, 1, 1], [], []>} : vector<8x64xbf16>, vector<64x256xbf16>, vector<8x256xf32> -> vector<8x256xf32>
    %c72_112 = arith.constant 72 : index
    %c0_113 = arith.constant 0 : index
    %413 = vector.load %arg10[%c72_112, %c0_113] : memref<80x256xf32, #tpu.memory_space<vmem>>, vector<8x256xf32>
    %414 = arith.addf %413, %412 : vector<8x256xf32>
    %415 = vector.extract_strided_slice %414 {offsets = [0, 0], sizes = [8, 192], strides = [1, 1]} : vector<8x256xf32> to vector<8x192xf32>
    %416 = arith.negf %415 : vector<8x192xf32>
    %417 = math.exp %416 : vector<8x192xf32>
    %cst_114 = arith.constant 1.000000e+00 : f32
    %418 = vector.broadcast %cst_114 : f32 to vector<8x192xf32>
    %419 = arith.addf %418, %417 : vector<8x192xf32>
    %420 = arith.divf %418, %419 : vector<8x192xf32>
    %421 = vector.extract_strided_slice %414 {offsets = [0, 192], sizes = [8, 64], strides = [1, 1]} : vector<8x256xf32> to vector<8x64xf32>
    %422 = math.tanh %421 : vector<8x64xf32>
    %423 = vector.extract_strided_slice %420 {offsets = [0, 0], sizes = [8, 64], strides = [1, 1]} : vector<8x192xf32> to vector<8x64xf32>
    %424 = vector.extract_strided_slice %420 {offsets = [0, 64], sizes = [8, 64], strides = [1, 1]} : vector<8x192xf32> to vector<8x64xf32>
    %425 = vector.extract_strided_slice %420 {offsets = [0, 128], sizes = [8, 64], strides = [1, 1]} : vector<8x192xf32> to vector<8x64xf32>
    %426 = arith.mulf %424, %408 : vector<8x64xf32>
    %427 = arith.mulf %423, %422 : vector<8x64xf32>
    %428 = arith.addf %426, %427 : vector<8x64xf32>
    %429 = math.tanh %428 : vector<8x64xf32>
    %430 = arith.mulf %425, %429 : vector<8x64xf32>
    %431 = arith.truncf %430 : vector<8x64xf32> to vector<8x64xbf16>
    %c0_115 = arith.constant 0 : index
    %c0_116 = arith.constant 0 : index
    %432 = vector.load %arg7[%c0_115, %c0_116] : memref<64x128xbf16, #tpu.memory_space<vmem>>, vector<64x128xbf16>
    %cst_117 = arith.constant dense<0.000000e+00> : vector<8x128xf32>
    %433 = tpu.matmul %431, %432, %cst_117 {dimension_numbers = #tpu.dot_dimension_numbers<[1], [0], [0], [1], [0, 0, 1, 1], [], []>} : vector<8x64xbf16>, vector<64x128xbf16>, vector<8x128xf32> -> vector<8x128xf32>
    %c0_118 = arith.constant 0 : index
    %c0_119 = arith.constant 0 : index
    %434 = vector.load %arg8[%c0_118, %c0_119] : memref<1x128xf32, #tpu.memory_space<vmem>>, vector<1x128xf32>
    %435 = vector.broadcast %434 : vector<1x128xf32> to vector<8x128xf32>
    %436 = arith.addf %433, %435 : vector<8x128xf32>
    %c0_120 = arith.constant 0 : index
    %c0_121 = arith.constant 0 : index
    %437 = vector.load %arg9[%c0_120, %c0_121] : memref<8x128xf32, #tpu.memory_space<vmem>>, vector<8x128xf32>
    tpu.vector_store %arg9[%c0_120, %c0_121], %436 {strides = array<i32>} : memref<8x128xf32, #tpu.memory_space<vmem>>, vector<8x128xf32>,
    return
  }
}

</mosaic_0001>

<bundles_post_ra>
// kernel: tpu_custom_call.1
= control target key start
LH: loop header
LB: loop body
LE: loop exit
PB: predicated region body
PF: predicated region fallthrough
CT: control target
= control target key end

     0   :  { %14 = vsyncpa [#allocation5], 0  ;;  %s3528_s0 = inlined_call_operand.vmem [shape: bf16[80,64], index: 0, kind: input, shape index: {}]   ;;  %s3529_s1 = inlined_call_operand.vmem [shape: bf16[64,256], index: 1, kind: input, shape index: {}]   ;;  %s3530_s2 = inlined_call_operand.hbm [shape: bf16[64,256], index: 2, kind: input, shape index: {}]   ;;  %s3531_s3 = inlined_call_operand.vmem [shape: f32[1,256], index: 3, kind: input, shape index: {}]   ;;  %s3532_s4 = inlined_call_operand.hbm [shape: bf16[64,256], index: 4, kind: input, shape index: {}]   ;;  %s3533_s5 = inlined_call_operand.hbm [shape: bf16[64,256], index: 5, kind: input, shape index: {}]   ;;  %s3534_s6 = inlined_call_operand.hbm [shape: f32[1,256], index: 6, kind: input, shape index: {}]   ;;  %s3535_s7 = inlined_call_operand.vmem [shape: bf16[64,128], index: 7, kind: input, shape index: {}]   ;;  %s3536_s8 = inlined_call_operand.vmem [shape: f32[1,128], index: 8, kind: input, shape index: {}]   ;;  %s3537_s9 = inlined_call_operand.hbm [shape: f32[8,128], index: 9, kind: output, shape index: {}]  }
   0x1   :  { %15 = vsyncpa [#allocation8], 0 }
   0x2   :  { %16 = vsyncpa [#allocation11], 0 }
   0x3   :  { %17 = vsyncpa [#allocation6], 0  ;;  %s2830_s30 = smov [#allocation7]   ;;  %s2831_s11 = smov [#allocation4]  }
   0x4   :  { %s41_s10 = sshll.u32 %s2830_s30, 4  ;;  %s27_s12 = sshll.u32 %s2831_s11, 4  ;;  %s42_s10 = int_to_ptr.vmem [resolvable:$true] %s41_s10  ;;  %s2891_s12 = int_to_ptr.vmem [resolvable:$true] %s27_s12 }
   0x5   :  { %s2712_s15 = scalar_lea.hbm %s3532_s4, 1024 }
   0x6   :  { %p2713_p0 = scmp.ne.s32.totalorder %s3532_s4, %s2712_s15  ;;  %p2716_p1 = scmp.lt.u32.totalorder %s2712_s15, %s3532_s4 }
   0x8   :  { %p2718_p2 = pnand %p2716_p1, %p2713_p0 }
   0xa   :  { %2721 = shalt.err (!%p2718_p2)
}
   0xb   :  { %s2722_s20 = scalar_lea.vmem %s42_s10, 1024  ;;  %p2727_p4 = scmp.lt.s32.totalorder %s42_s10, %s42_s10 }
   0xc   :  { %p2723_p3 = scmp.ne.s32.totalorder %s42_s10, %s2722_s20  ;;  %p2728_p5 = scmp.lt.s32.totalorder %s2722_s20, %s2722_s20 }
   0xe   :  { %p2729_p6 = por %p2728_p5, %p2727_p4 }
  0x10   :  { %p2730_p7 = pnand %p2729_p6, %p2723_p3 }
  0x12   :  { %2733 = shalt.err (!%p2730_p7)
}
  0x13   :  { %s2832_s21 = smov 128   ;;  %s2833_s22 = smov 8  }
  0x14   :  { %47 = dma.hbm_to_vmem [thread:$0]  %s3532_s4, 1024, %s42_s10, [#allocation8], %s2832_s21, %s2832_s21, %s2833_s22  }
  0x15   :  { %s2734_s27 = scalar_lea.hbm %s3530_s2, 1024 }
  0x16   :  { %p2735_p8 = scmp.ne.s32.totalorder %s3530_s2, %s2734_s27  ;;  %p2738_p9 = scmp.lt.u32.totalorder %s2734_s27, %s3530_s2 }
  0x18   :  { %p2740_p10 = pnand %p2738_p9, %p2735_p8 }
  0x1a   :  { %2743 = shalt.err (!%p2740_p10)
}
  0x1b   :  { %s2744_s13 = scalar_lea.vmem %s2891_s12, 1024  ;;  %p2749_p12 = scmp.lt.s32.totalorder %s2891_s12, %s2891_s12 }
  0x1c   :  { %p2745_p11 = scmp.ne.s32.totalorder %s2891_s12, %s2744_s13  ;;  %p2750_p13 = scmp.lt.s32.totalorder %s2744_s13, %s2744_s13 }
  0x1e   :  { %p2751_p0 = por %p2750_p13, %p2749_p12 }
  0x20   :  { %p2752_p1 = pnand %p2751_p0, %p2745_p11 }
  0x22   :  { %2755 = shalt.err (!%p2752_p1)
}
  0x23   :  { %33 = dma.hbm_to_vmem [thread:$0]  %s3530_s2, 1024, %s2891_s12, [#allocation5], %s2832_s21, %s2832_s21, %s2833_s22  }
  0x24   :  { %s2834_s14 = smov [#allocation9]   ;;  %s2835_s16 = smov [#allocation10]  }
  0x25   :  { %s53_s15 = sshll.u32 %s2834_s14, 4  ;;  %s66_s17 = sshll.u32 %s2835_s16, 4  ;;  %s54_s15 = int_to_ptr.vmem [resolvable:$true] %s53_s15  ;;  %s67_s17 = int_to_ptr.vmem [resolvable:$true] %s66_s17 }
  0x26   :  { %s2756_s20 = scalar_lea.hbm %s3533_s5, 1024 }
  0x27   :  { %p2757_p2 = scmp.ne.s32.totalorder %s3533_s5, %s2756_s20  ;;  %p2760_p3 = scmp.lt.u32.totalorder %s2756_s20, %s3533_s5 }
  0x29   :  { %p2762_p4 = pnand %p2760_p3, %p2757_p2 }
  0x2b   :  { %2765 = shalt.err (!%p2762_p4)
}
  0x2c   :  { %s2766_s2 = scalar_lea.vmem %s54_s15, 1024  ;;  %p2771_p6 = scmp.lt.s32.totalorder %s54_s15, %s54_s15 }
  0x2d   :  { %p2767_p5 = scmp.ne.s32.totalorder %s54_s15, %s2766_s2  ;;  %p2772_p7 = scmp.lt.s32.totalorder %s2766_s2, %s2766_s2 }
  0x2f   :  { %p2773_p8 = por %p2772_p7, %p2771_p6 }
  0x31   :  { %p2774_p9 = pnand %p2773_p8, %p2767_p5 }
  0x33   :  { %2777 = shalt.err (!%p2774_p9)
}
  0x34   :  { %59 = dma.hbm_to_vmem [thread:$0]  %s3533_s5, 1024, %s54_s15, [#allocation8], %s2832_s21, %s2832_s21, %s2833_s22  }
  0x35   :  { %s2778_s30 = scalar_lea.hbm %s3534_s6, 32 }
  0x36   :  { %p2779_p10 = scmp.ne.s32.totalorder %s3534_s6, %s2778_s30  ;;  %p2782_p11 = scmp.lt.u32.totalorder %s2778_s30, %s3534_s6 }
  0x38   :  { %p2784_p12 = pnand %p2782_p11, %p2779_p10 }
  0x3a   :  { %2787 = shalt.err (!%p2784_p12)
}
  0x3b   :  { %s2788_s14 = scalar_lea.vmem %s67_s17, 32  ;;  %p2793_p0 = scmp.lt.s32.totalorder %s67_s17, %s67_s17 }
  0x3c   :  { %p2789_p13 = scmp.ne.s32.totalorder %s67_s17, %s2788_s14  ;;  %p2794_p1 = scmp.lt.s32.totalorder %s2788_s14, %s2788_s14 }
  0x3e   :  { %p2795_p2 = por %p2794_p1, %p2793_p0 }
  0x40   :  { %p2796_p3 = pnand %p2795_p2, %p2789_p13 }
  0x42   :  { %2799 = shalt.err (!%p2796_p3)
}
  0x43   :  { %69 = dma.hbm_to_vmem [thread:$0]  %s3534_s6, 32, %s67_s17, [#allocation11]  }
  0x44   :  { %2822 = dma.done.wait [#allocation5], 1024  }
  0x45   :  { %2823 = vsyncadd [#allocation5], 4294966272 }
  0x46   :  { %2824 = dma.done.wait [#allocation8], 2048  }
  0x47   :  { %2825 = vsyncadd [#allocation8], 4294965248 }
  0x48   :  { %2826 = dma.done.wait [#allocation11], 32  }
  0x49   :  { %2827 = vsyncadd [#allocation11], 4294967264  ;;  %v2836_v0 = vmov 0   ;;  %v2415_v1 = vld [vmem:[%s3529_s1 + $0x4] ss:$8 sps:$4 sm:$0xff]   ;;  %vm182_vm0 = vcmask 523264   ;;  %v107_v18 = vlaneseq }
  0x4a   :  { %230 = vmatprep.mubr.bf16.mxu0 %v2836_v0  ;;  %384 = vmatprep.mubr.bf16.mxu1 %v2836_v0  ;;  %v2960_v2 = vld [vmem:[#allocation4 + $0x4] ss:$8 sps:$4 sm:$0xff]   ;;  %v2419_v3 = vld [vmem:[%s3529_s1] ss:$8 sps:$4 sm:$0xff]   ;;  %v2972_v6 = vld [vmem:[#allocation4 + $0x14] ss:$8 sps:$4 sm:$0xff]  }
  0x4b   :  { %198 = vmatprep.subr.bf16.mxu0 %v2415_v1  ;;  %v2965_v4 = vld [vmem:[#allocation4] ss:$8 sps:$4 sm:$0xff]   ;;  %352 = vmatprep.subr.bf16.mxu1 %v2960_v2  ;;  %v2421_v5 = vld [vmem:[%s3529_s1 + $0x14] ss:$8 sps:$4 sm:$0xff]   ;;  %v2977_v8 = vld [vmem:[#allocation4 + $0x10] ss:$8 sps:$4 sm:$0xff]  }
  0x4c   :  { %199 = vmatpush1.bf16.msra.mxu0 %v2419_v3  ;;  %353 = vmatpush1.bf16.msra.mxu1 %v2965_v4  ;;  %v2425_v7 = vld [vmem:[%s3529_s1 + $0x10] ss:$8 sps:$4 sm:$0xff]   ;;  %v2427_v9 = vld [vmem:[%s3529_s1 + $0x24] ss:$8 sps:$4 sm:$0xff]   ;;  %v2431_v11 = vld [vmem:[%s3529_s1 + $0x20] ss:$8 sps:$4 sm:$0xff]  }
  0x4d   :  { %200 = vmatprep.subr.bf16.mxu0 %v2421_v5  ;;  %354 = vmatprep.subr.bf16.mxu1 %v2972_v6  ;;  %v2983_v10 = vld [vmem:[#allocation4 + $0x24] ss:$8 sps:$4 sm:$0xff]   ;;  %v2988_v12 = vld [vmem:[#allocation4 + $0x20] ss:$8 sps:$4 sm:$0xff]   ;;  %v2995_v14 = vld [vmem:[#allocation4 + $0x34] ss:$8 sps:$4 sm:$0xff]  }
  0x4e   :  { %v2433_v13 = vld [vmem:[%s3529_s1 + $0x34] ss:$8 sps:$4 sm:$0xff]   ;;  %v2437_v15 = vld [vmem:[%s3529_s1 + $0x30] ss:$8 sps:$4 sm:$0xff]   ;;  %v2439_v17 = vld [vmem:[%s3528_s0] sm:$0xff]   ;;  %v3030_v19 = vshrl.u32 %v107_v18, 7 }
  0x4f   :  { %v3000_v16 = vld [vmem:[#allocation4 + $0x30] ss:$8 sps:$4 sm:$0xff]   ;;  %v105_v21 = vld [vmem:[%s3531_s3] sm:$0x3]  ;;  %s2837_s3 = smov 64   ;;  %vm2839_vm1 = vmmov 0  }
  0x50   :  { %201 = vmatpush1.bf16.msra.mxu0 %v2425_v7  ;;  %355 = vmatpush1.bf16.msra.mxu1 %v2977_v8  ;;  %v109_v20 = vsub.s32 0, %v3030_v19  ;;  %v113_v22 = vsub.s32 1, %v3030_v19  ;;  %s2840_s25 = smov [#allocation12]  }
  0x51   :  { %202 = vmatprep.subr.bf16.mxu0 %v2427_v9  ;;  %356 = vmatprep.subr.bf16.mxu1 %v2983_v10  ;;  %s2265_s26 = sshll.u32 %s2840_s25, 4  ;;  %s2266_s26 = int_to_ptr.vmem [resolvable:$true] %s2265_s26 }
  0x52   :  { %v3039_v23 = vrot.slane %v105_v21, %v109_v20  ;;  %v3043_v24 = vrot.slane %v105_v21, %v113_v22  ;;  %s2800_s2 = scalar_lea.vmem %s2266_s26, 128  ;;  %p2805_p5 = scmp.lt.s32.totalorder %s2266_s26, %s2266_s26 }
  0x53   :  { %p2801_p4 = scmp.ne.s32.totalorder %s2266_s26, %s2800_s2  ;;  %p2806_p6 = scmp.lt.s32.totalorder %s2800_s2, %s2800_s2 }
  0x54   :  { %203 = vmatpush1.bf16.msra.mxu0 %v2431_v11  ;;  %357 = vmatpush1.bf16.msra.mxu1 %v2988_v12 }
  0x55   :  { %204 = vmatprep.subr.bf16.mxu0 %v2433_v13  ;;  %358 = vmatprep.subr.bf16.mxu1 %v2995_v14  ;;  %v2440_v13 = vld [vmem:[%s3528_s0 + $0x8] sm:$0xff]   ;;  %p2807_p7 = por %p2806_p6, %p2805_p5 }
  0x57   :  { %p2808_p8 = pnand %p2807_p7, %p2801_p4 }
  0x58   :  { %205 = vmatpush1.bf16.msra.mxu0 %v2437_v15  ;;  %359 = vmatpush1.bf16.msra.mxu1 %v3000_v16 }
  0x59   :  { %432 = vmatprep.subr.bf16.mxu1 %v2960_v2  ;;  %592 = vmatprep.subr.bf16.mxu0 %v2960_v2 }
  0x5b   :  { %2289 = vmatmul.mubr.msk.bf16.vlgmr.msra.gmra.mrb[0].mxu0 %vm182_vm0, %v2439_v17  ;;  %385 = vmatmul.mubr.bf16.vlgmr.msra.gmra.mrb[0].mxu1 %v2836_v0 }
  0x5c   :  { %433 = vmatpush1.bf16.msra.mxu1 %v2965_v4  ;;  %464 = vmatprep.mubr.bf16.mxu1 %v2836_v0 }
  0x5d   :  { %434 = vmatprep.subr.bf16.mxu1 %v2972_v6  ;;  %240 = vmatprep.mubr.bf16.mxu0 %v2836_v0 }
  0x5e   :  { %593 = vmatpush1.bf16.msra.mxu0 %v2965_v4 }
  0x5f   :  { %594 = vmatprep.subr.bf16.mxu0 %v2972_v6 }
  0x60   :  { %435 = vmatpush1.bf16.msra.mxu1 %v2977_v8 }
  0x61   :  { %436 = vmatprep.subr.bf16.mxu1 %v2983_v10 }
  0x62   :  { %595 = vmatpush1.bf16.msra.mxu0 %v2977_v8 }
  0x63   :  { %596 = vmatprep.subr.bf16.mxu0 %v2983_v10  ;;  %2290 = vmatmul.mubr.msk.bf16.gmra.mrb[4].mxu0 %vm182_vm0, %v2440_v13 }
  0x64   :  { %437 = vmatpush1.bf16.msra.mxu1 %v2988_v12  ;;  %250 = vmatprep.mubr.bf16.mxu0 %v2836_v0 }
  0x65   :  { %438 = vmatprep.subr.bf16.mxu1 %v2995_v14 }
  0x66   :  { %597 = vmatpush1.bf16.msra.mxu0 %v2988_v12 }
  0x67   :  { %598 = vmatprep.subr.bf16.mxu0 %v2995_v14 }
  0x68   :  { %439 = vmatpush1.bf16.msra.mxu1 %v3000_v16 }
  0x69   :  { %512 = vmatprep.subr.bf16.mxu1 %v2960_v2 }
  0x6a   :  { %599 = vmatpush1.bf16.msra.mxu0 %v3000_v16 }
  0x6b   :  { %752 = vmatprep.subr.bf16.mxu0 %v2960_v2 }
 0x12e   :  { %v232_v25 = vpop.f32.mrb[0].mxu0  ;;  %v386_v26 = vpop.f32.mrb[0].mxu1 }
 0x12f   :  { %v233_v27 = vadd.f32 %v232_v25, %v3039_v23  ;;  %v234_v28 = vpop.f32.mrb[1].mxu0  ;;  %v388_v29 = vpop.f32.mrb[1].mxu1 }
 0x130   :  { %v235_v30 = vadd.f32 %v234_v28, %v3043_v24  ;;  %v236_v31 = vpop.f32.mrb[2].mxu0  ;;  %v390_v32 = vpop.f32.mrb[2].mxu1 }
 0x131   :  { %v395_v33 = vadd.f32 %v386_v26, %v233_v27  ;;  %v238_v34 = vpop.f32.mrb[3].mxu0  ;;  %v391_v35 = vpop.f32.mrb[3].mxu1  ;;  %v237_v55 = vadd.f32 %v236_v31, %v3039_v23 }
 0x132   :  { %v396_v36 = vadd.f32 %v388_v29, %v235_v30  ;;  %v239_v56 = vadd.f32 %v238_v34, %v3043_v24 }
 0x133   :  { %v2302_v38 = vmul.f32 -1.442695, %v395_v33 }
 0x134   :  { %2472 = vtanh.f32 %v396_v36  ;;  %v2303_v48 = vmul.f32 -1.442695, %v396_v36 }
 0x135   :  { %2474 = vpow2.f32 %v2302_v38 }
 0x136   :  { %v242_v26 = vpop.f32.mrb[4].mxu0 }
 0x137   :  { %v244_v27 = vpop.f32.mrb[5].mxu0  ;;  %v243_v36 = vadd.f32 %v242_v26, %v3039_v23 }
 0x138   :  { %v3071_v28 = vpop.f32.mrb[6].mxu0 }
 0x139   :  { %v3073_v29 = vpop.f32.mrb[7].mxu0 }
 0x13e   :  { %v2473_v37 = vpop.eup %2472 }
 0x13f   :  { %412 = vrot.lane.b32.xlu0 %v2473_v37, %s2837_s3  ;;  %v2475_v39 = vpop.eup %2474  ;;  %v245_v37 = vadd.f32 %v244_v27, %v3043_v24  ;;  %v247_v27 = vadd.f32 %v3071_v28, %v3039_v23 }
 0x140   :  { %v403_v40 = vadd.f32 1.0, %v2475_v39 }
 0x142   :  { %2476 = vrcp.f32 %v403_v40 }
 0x14c   :  { %v2477_v41 = vpop.eup %2476 }
 0x14d   :  { %v410_v44 = vmul.f32 0.0, %v2477_v41 }
 0x1b1   :  { %v413_v42 = vpop.permute.xlu0 %412 }
 0x1b2   :  { %v415_v43 = vmul.f32 %v2477_v41, %v413_v42 }
 0x1b4   :  { %417 = vrot.lane.b32.xlu0 %v415_v43, %s2837_s3 }
 0x226   :  { %v418_v45 = vpop.permute.xlu0 %417 }
 0x227   :  { %v420_v46 = vadd.f32 %v418_v45, %v410_v44 }
 0x229   :  { %2478 = vtanh.f32 %v420_v46 }
 0x22a   :  { %2480 = vpow2.f32 %v2303_v48 }
 0x233   :  { %v2479_v47 = vpop.eup %2478 }
 0x234   :  { %423 = vrot.lane.b32.xlu1 %v2479_v47, %s2837_s3  ;;  %v2481_v49 = vpop.eup %2480 }
 0x235   :  { %v404_v50 = vadd.f32 1.0, %v2481_v49 }
 0x237   :  { %2482 = vrcp.f32 %v404_v50 }
 0x241   :  { %v2483_v51 = vpop.eup %2482 }
 0x2a6   :  { %v424_v52 = vpop.permute.xlu1 %423 }
 0x2a7   :  { %v426_v53 = vmul.f32 %v2483_v51, %v424_v52  ;;  %v2441_v51 = vld [vmem:[%s3528_s0 + $0x10] sm:$0xff]   ;;  %v2442_v52 = vld [vmem:[%s3528_s0 + $0x18] sm:$0xff]  }
 0x2a8   :  { %2291 = vmatmul.mubr.msk.bf16.gmra.mrb[8].mxu0 %vm182_vm0, %v2441_v51 }
 0x2a9   :  { %427 = vst.msk [vmem:[#allocation3] sm:$0xff] %vm182_vm0, %v426_v53  ;;  %v428_v54 = vpack.c.bf16 %v426_v53, %v426_v53  ;;  %260 = vmatprep.mubr.bf16.mxu0 %v2836_v0  ;;  %v2443_v53 = vld [vmem:[%s3528_s0 + $0x20] sm:$0xff]  }
 0x2ab   :  { %2304 = vmatmul.mubr.msk.bf16.vlgmr.msra.gmra.mrb[4].mxu1 %vm182_vm0, %v428_v54 }
 0x2ac   :  { %513 = vmatpush1.bf16.msra.mxu1 %v2965_v4  ;;  %544 = vmatprep.mubr.bf16.mxu1 %v2836_v0 }
 0x2ad   :  { %514 = vmatprep.subr.bf16.mxu1 %v2972_v6 }
 0x2b0   :  { %515 = vmatpush1.bf16.msra.mxu1 %v2977_v8  ;;  %2292 = vmatmul.mubr.msk.bf16.gmra.mrb[12].mxu0 %vm182_vm0, %v2442_v52 }
 0x2b1   :  { %516 = vmatprep.subr.bf16.mxu1 %v2983_v10  ;;  %270 = vmatprep.mubr.bf16.mxu0 %v2836_v0 }
 0x2b4   :  { %517 = vmatpush1.bf16.msra.mxu1 %v2988_v12 }
 0x2b5   :  { %518 = vmatprep.subr.bf16.mxu1 %v2995_v14 }
 0x2b8   :  { %519 = vmatpush1.bf16.msra.mxu1 %v3000_v16  ;;  %2293 = vmatmul.mubr.msk.bf16.gmra.mrb[16].mxu0 %vm182_vm0, %v2443_v53 }
 0x2b9   :  { %672 = vmatprep.subr.bf16.mxu1 %v2960_v2  ;;  %624 = vmatprep.mubr.bf16.mxu0 %v2836_v0 }
 0x37e   :  { %v466_v57 = vpop.f32.mrb[4].mxu1 }
 0x37f   :  { %v475_v58 = vadd.f32 %v466_v57, %v237_v55  ;;  %v468_v59 = vpop.f32.mrb[5].mxu1 }
 0x380   :  { %v476_v60 = vadd.f32 %v468_v59, %v239_v56  ;;  %v470_v61 = vpop.f32.mrb[6].mxu1  ;;  %v3106_v59 = vpop.f32.mrb[8].mxu0 }
 0x381   :  { %v471_v62 = vpop.f32.mrb[7].mxu1  ;;  %v2305_v1 = vmul.f32 -1.442695, %v475_v58  ;;  %v253_v53 = vadd.f32 %v3106_v59, %v3039_v23 }
 0x382   :  { %2484 = vtanh.f32 %v476_v60  ;;  %v2306_v25 = vmul.f32 -1.442695, %v476_v60  ;;  %v3108_v60 = vpop.f32.mrb[9].mxu0 }
 0x383   :  { %2486 = vpow2.f32 %v2305_v1  ;;  %v3110_v61 = vpop.f32.mrb[10].mxu0 }
 0x384   :  { %v3112_v62 = vpop.f32.mrb[11].mxu0 }
 0x38c   :  { %v2485_v63 = vpop.eup %2484 }
 0x38d   :  { %492 = vrot.lane.b32.xlu1 %v2485_v63, %s2837_s3  ;;  %v2487_v3 = vpop.eup %2486  ;;  %v3114_v63 = vpop.f32.mrb[12].mxu0 }
 0x38e   :  { %v483_v5 = vadd.f32 1.0, %v2487_v3  ;;  %v3116_v1 = vpop.f32.mrb[13].mxu0 }
 0x38f   :  { %v3118_v3 = vpop.f32.mrb[14].mxu0 }
 0x390   :  { %2488 = vrcp.f32 %v483_v5  ;;  %v3120_v5 = vpop.f32.mrb[15].mxu0 }
 0x39a   :  { %v2489_v7 = vpop.eup %2488 }
 0x39b   :  { %v490_v15 = vmul.f32 %v2489_v7, %v420_v46 }
 0x3ff   :  { %v493_v9 = vpop.permute.xlu1 %492 }
 0x400   :  { %v495_v11 = vmul.f32 %v2489_v7, %v493_v9 }
 0x402   :  { %497 = vrot.lane.b32.xlu0 %v495_v11, %s2837_s3  ;;  %v3122_v11 = vpop.f32.mrb[16].mxu0 }
 0x403   :  { %v3124_v13 = vpop.f32.mrb[17].mxu0 }
 0x474   :  { %v498_v17 = vpop.permute.xlu0 %497 }
 0x475   :  { %v500_v18 = vadd.f32 %v498_v17, %v490_v15  ;;  %v3126_v15 = vpop.f32.mrb[18].mxu0 }
 0x476   :  { %v3128_v17 = vpop.f32.mrb[19].mxu0 }
 0x477   :  { %2490 = vtanh.f32 %v500_v18 }
 0x478   :  { %2492 = vpow2.f32 %v2306_v25 }
 0x481   :  { %v2491_v21 = vpop.eup %2490 }
 0x482   :  { %503 = vrot.lane.b32.xlu1 %v2491_v21, %s2837_s3  ;;  %v2493_v30 = vpop.eup %2492 }
 0x483   :  { %v484_v31 = vadd.f32 1.0, %v2493_v30  ;;  %v249_v30 = vadd.f32 %v3073_v29, %v3043_v24 }
 0x485   :  { %2494 = vrcp.f32 %v484_v31 }
 0x48f   :  { %v2495_v32 = vpop.eup %2494 }
 0x4f4   :  { %v504_v33 = vpop.permute.xlu1 %503 }
 0x4f5   :  { %v506_v34 = vmul.f32 %v2495_v32, %v504_v33 }
 0x4f7   :  { %507 = vst.msk [vmem:[#allocation3 + $0x8] sm:$0xff] %vm182_vm0, %v506_v34  ;;  %v508_v35 = vpack.c.bf16 %v506_v34, %v506_v34 }
 0x4f9   :  { %2307 = vmatmul.mubr.msk.bf16.vlgmr.msra.gmra.mrb[8].mxu1 %vm182_vm0, %v508_v35 }
 0x4fa   :  { %673 = vmatpush1.bf16.msra.mxu1 %v2965_v4  ;;  %704 = vmatprep.mubr.bf16.mxu1 %v2836_v0 }
 0x4fb   :  { %674 = vmatprep.subr.bf16.mxu1 %v2972_v6 }
 0x4fe   :  { %675 = vmatpush1.bf16.msra.mxu1 %v2977_v8 }
 0x4ff   :  { %676 = vmatprep.subr.bf16.mxu1 %v2983_v10 }
 0x502   :  { %677 = vmatpush1.bf16.msra.mxu1 %v2988_v12 }
 0x503   :  { %678 = vmatprep.subr.bf16.mxu1 %v2995_v14 }
 0x506   :  { %679 = vmatpush1.bf16.msra.mxu1 %v3000_v16 }
 0x507   :  { %832 = vmatprep.subr.bf16.mxu1 %v2960_v2 }
 0x5cc   :  { %v546_v38 = vpop.f32.mrb[8].mxu1 }
 0x5cd   :  { %v555_v39 = vadd.f32 %v546_v38, %v243_v36  ;;  %v548_v40 = vpop.f32.mrb[9].mxu1 }
 0x5ce   :  { %v556_v41 = vadd.f32 %v548_v40, %v245_v37  ;;  %v550_v42 = vpop.f32.mrb[10].mxu1 }
 0x5cf   :  { %v551_v43 = vpop.f32.mrb[11].mxu1  ;;  %v2308_v45 = vmul.f32 -1.442695, %v555_v39 }
 0x5d0   :  { %2496 = vtanh.f32 %v556_v41  ;;  %v2309_v58 = vmul.f32 -1.442695, %v556_v41 }
 0x5d1   :  { %2498 = vpow2.f32 %v2308_v45 }
 0x5da   :  { %v2497_v44 = vpop.eup %2496 }
 0x5db   :  { %572 = vrot.lane.b32.xlu0 %v2497_v44, %s2837_s3  ;;  %v2499_v46 = vpop.eup %2498 }
 0x5dc   :  { %v563_v47 = vadd.f32 1.0, %v2499_v46 }
 0x5de   :  { %2500 = vrcp.f32 %v563_v47 }
 0x5e8   :  { %v2501_v48 = vpop.eup %2500 }
 0x5e9   :  { %v570_v54 = vmul.f32 %v2501_v48, %v500_v18 }
 0x64d   :  { %v573_v49 = vpop.permute.xlu0 %572 }
 0x64e   :  { %v575_v50 = vmul.f32 %v2501_v48, %v573_v49 }
 0x650   :  { %577 = vrot.lane.b32.xlu1 %v575_v50, %s2837_s3 }
 0x6c2   :  { %v578_v55 = vpop.permute.xlu1 %577 }
 0x6c3   :  { %v580_v56 = vadd.f32 %v578_v55, %v570_v54  ;;  %v255_v54 = vadd.f32 %v3108_v60, %v3043_v24 }
 0x6c5   :  { %2502 = vtanh.f32 %v580_v56 }
 0x6c6   :  { %2504 = vpow2.f32 %v2309_v58 }
 0x6cf   :  { %v2503_v57 = vpop.eup %2502 }
 0x6d0   :  { %583 = vrot.lane.b32.xlu0 %v2503_v57, %s2837_s3  ;;  %v2505_v7 = vpop.eup %2504 }
 0x6d1   :  { %v564_v9 = vadd.f32 1.0, %v2505_v7 }
 0x6d3   :  { %2506 = vrcp.f32 %v564_v9 }
 0x6dd   :  { %v2507_v18 = vpop.eup %2506 }
 0x742   :  { %v584_v21 = vpop.permute.xlu0 %583 }
 0x743   :  { %v586_v25 = vmul.f32 %v2507_v18, %v584_v21 }
 0x745   :  { %587 = vst.msk [vmem:[#allocation3 + $0x10] sm:$0xff] %vm182_vm0, %v586_v25  ;;  %v588_v26 = vpack.c.bf16 %v586_v25, %v586_v25 }
 0x747   :  { %2310 = vmatmul.mubr.msk.bf16.vlgmr.msra.gmra.mrb[20].mxu0 %vm182_vm0, %v588_v26 }
 0x748   :  { %753 = vmatpush1.bf16.msra.mxu0 %v2965_v4  ;;  %784 = vmatprep.mubr.bf16.mxu0 %v2836_v0 }
 0x749   :  { %754 = vmatprep.subr.bf16.mxu0 %v2972_v6 }
 0x74c   :  { %755 = vmatpush1.bf16.msra.mxu0 %v2977_v8 }
 0x74d   :  { %756 = vmatprep.subr.bf16.mxu0 %v2983_v10 }
 0x750   :  { %757 = vmatpush1.bf16.msra.mxu0 %v2988_v12 }
 0x751   :  { %758 = vmatprep.subr.bf16.mxu0 %v2995_v14 }
 0x754   :  { %759 = vmatpush1.bf16.msra.mxu0 %v3000_v16 }
 0x755   :  { %912 = vmatprep.subr.bf16.mxu0 %v2960_v2 }
 0x81a   :  { %v626_v31 = vpop.f32.mrb[20].mxu0 }
 0x81b   :  { %v635_v32 = vadd.f32 %v626_v31, %v247_v27  ;;  %v628_v33 = vpop.f32.mrb[21].mxu0 }
 0x81c   :  { %v636_v34 = vadd.f32 %v628_v33, %v249_v30  ;;  %v630_v35 = vpop.f32.mrb[22].mxu0 }
 0x81d   :  { %v631_v36 = vpop.f32.mrb[23].mxu0  ;;  %v2311_v38 = vmul.f32 -1.442695, %v635_v32 }
 0x81e   :  { %2508 = vtanh.f32 %v636_v34  ;;  %v2312_v46 = vmul.f32 -1.442695, %v636_v34 }
 0x81f   :  { %2510 = vpow2.f32 %v2311_v38 }
 0x828   :  { %v2509_v37 = vpop.eup %2508 }
 0x829   :  { %652 = vrot.lane.b32.xlu1 %v2509_v37, %s2837_s3  ;;  %v2511_v39 = vpop.eup %2510 }
 0x82a   :  { %v643_v40 = vadd.f32 1.0, %v2511_v39 }
 0x82c   :  { %2512 = vrcp.f32 %v643_v40 }
 0x836   :  { %v2513_v41 = vpop.eup %2512 }
 0x837   :  { %v650_v29 = vmul.f32 %v2513_v41, %v580_v56 }
 0x89b   :  { %v653_v28 = vpop.permute.xlu1 %652 }
 0x89c   :  { %v655_v42 = vmul.f32 %v2513_v41, %v653_v28  ;;  %v257_v41 = vadd.f32 %v3110_v61, %v3039_v23  ;;  %v259_v28 = vadd.f32 %v3112_v62, %v3043_v24 }
 0x89e   :  { %657 = vrot.lane.b32.xlu0 %v655_v42, %s2837_s3 }
 0x910   :  { %v658_v43 = vpop.permute.xlu0 %657 }
 0x911   :  { %v660_v44 = vadd.f32 %v658_v43, %v650_v29 }
 0x913   :  { %2514 = vtanh.f32 %v660_v44 }
 0x914   :  { %2516 = vpow2.f32 %v2312_v46 }
 0x91d   :  { %v2515_v45 = vpop.eup %2514 }
 0x91e   :  { %663 = vrot.lane.b32.xlu1 %v2515_v45, %s2837_s3  ;;  %v2517_v47 = vpop.eup %2516 }
 0x91f   :  { %v644_v48 = vadd.f32 1.0, %v2517_v47 }
 0x921   :  { %2518 = vrcp.f32 %v644_v48 }
 0x92b   :  { %v2519_v49 = vpop.eup %2518 }
 0x990   :  { %v664_v50 = vpop.permute.xlu1 %663 }
 0x991   :  { %v666_v51 = vmul.f32 %v2519_v49, %v664_v50 }
 0x993   :  { %667 = vst.msk [vmem:[#allocation3 + $0x18] sm:$0xff] %vm182_vm0, %v666_v51  ;;  %v668_v52 = vpack.c.bf16 %v666_v51, %v666_v51 }
 0x995   :  { %2313 = vmatmul.mubr.msk.bf16.vlgmr.msra.gmra.mrb[12].mxu1 %vm182_vm0, %v668_v52 }
 0x996   :  { %833 = vmatpush1.bf16.msra.mxu1 %v2965_v4  ;;  %864 = vmatprep.mubr.bf16.mxu1 %v2836_v0 }
 0x997   :  { %834 = vmatprep.subr.bf16.mxu1 %v2972_v6 }
 0x99a   :  { %835 = vmatpush1.bf16.msra.mxu1 %v2977_v8 }
 0x99b   :  { %836 = vmatprep.subr.bf16.mxu1 %v2983_v10 }
 0x99e   :  { %837 = vmatpush1.bf16.msra.mxu1 %v2988_v12 }
 0x99f   :  { %838 = vmatprep.subr.bf16.mxu1 %v2995_v14 }
 0x9a2   :  { %839 = vmatpush1.bf16.msra.mxu1 %v3000_v16 }
 0x9a3   :  { %992 = vmatprep.subr.bf16.mxu1 %v2960_v2 }
 0xa68   :  { %v706_v55 = vpop.f32.mrb[12].mxu1 }
 0xa69   :  { %v715_v56 = vadd.f32 %v706_v55, %v253_v53  ;;  %v708_v57 = vpop.f32.mrb[13].mxu1 }
 0xa6a   :  { %v716_v58 = vadd.f32 %v708_v57, %v255_v54  ;;  %v710_v7 = vpop.f32.mrb[14].mxu1 }
 0xa6b   :  { %v711_v9 = vpop.f32.mrb[15].mxu1  ;;  %v2314_v21 = vmul.f32 -1.442695, %v715_v56 }
 0xa6c   :  { %2520 = vtanh.f32 %v716_v58  ;;  %v2315_v34 = vmul.f32 -1.442695, %v716_v58 }
 0xa6d   :  { %2522 = vpow2.f32 %v2314_v21  ;;  %v263_v21 = vadd.f32 %v3114_v63, %v3039_v23 }
 0xa76   :  { %v2521_v18 = vpop.eup %2520 }
 0xa77   :  { %732 = vrot.lane.b32.xlu0 %v2521_v18, %s2837_s3  ;;  %v2523_v25 = vpop.eup %2522 }
 0xa78   :  { %v723_v26 = vadd.f32 1.0, %v2523_v25  ;;  %v265_v25 = vadd.f32 %v3116_v1, %v3043_v24 }
 0xa7a   :  { %2524 = vrcp.f32 %v723_v26 }
 0xa84   :  { %v2525_v27 = vpop.eup %2524 }
 0xa85   :  { %v730_v60 = vmul.f32 %v2525_v27, %v660_v44 }
 0xae9   :  { %v733_v59 = vpop.permute.xlu0 %732 }
 0xaea   :  { %v735_v30 = vmul.f32 %v2525_v27, %v733_v59 }
 0xaec   :  { %737 = vrot.lane.b32.xlu1 %v735_v30, %s2837_s3 }
 0xb5e   :  { %v738_v31 = vpop.permute.xlu1 %737 }
 0xb5f   :  { %v740_v32 = vadd.f32 %v738_v31, %v730_v60 }
 0xb61   :  { %2526 = vtanh.f32 %v740_v32 }
 0xb62   :  { %2528 = vpow2.f32 %v2315_v34 }
 0xb6b   :  { %v2527_v33 = vpop.eup %2526 }
 0xb6c   :  { %743 = vrot.lane.b32.xlu0 %v2527_v33, %s2837_s3  ;;  %v2529_v35 = vpop.eup %2528 }
 0xb6d   :  { %v724_v36 = vadd.f32 1.0, %v2529_v35 }
 0xb6f   :  { %2530 = vrcp.f32 %v724_v36 }
 0xb79   :  { %v2531_v37 = vpop.eup %2530 }
 0xbde   :  { %v744_v38 = vpop.permute.xlu0 %743 }
 0xbdf   :  { %v746_v39 = vmul.f32 %v2531_v37, %v744_v38 }
 0xbe1   :  { %747 = vst.msk [vmem:[#allocation3 + $0x20] sm:$0xff] %vm182_vm0, %v746_v39  ;;  %v748_v40 = vpack.c.bf16 %v746_v39, %v746_v39 }
 0xbe3   :  { %2316 = vmatmul.mubr.msk.bf16.vlgmr.msra.gmra.mrb[24].mxu0 %vm182_vm0, %v748_v40 }
 0xbe4   :  { %913 = vmatpush1.bf16.msra.mxu0 %v2965_v4  ;;  %944 = vmatprep.mubr.bf16.mxu0 %v2836_v0 }
 0xbe5   :  { %914 = vmatprep.subr.bf16.mxu0 %v2972_v6 }
 0xbe8   :  { %915 = vmatpush1.bf16.msra.mxu0 %v2977_v8 }
 0xbe9   :  { %916 = vmatprep.subr.bf16.mxu0 %v2983_v10 }
 0xbec   :  { %917 = vmatpush1.bf16.msra.mxu0 %v2988_v12 }
 0xbed   :  { %918 = vmatprep.subr.bf16.mxu0 %v2995_v14 }
 0xbf0   :  { %919 = vmatpush1.bf16.msra.mxu0 %v3000_v16 }
 0xbf1   :  { %1072 = vmatprep.subr.bf16.mxu0 %v2960_v2 }
 0xcb6   :  { %v786_v42 = vpop.f32.mrb[24].mxu0 }
 0xcb7   :  { %v795_v29 = vadd.f32 %v786_v42, %v257_v41  ;;  %v788_v43 = vpop.f32.mrb[25].mxu0 }
 0xcb8   :  { %v796_v44 = vadd.f32 %v788_v43, %v259_v28  ;;  %v790_v45 = vpop.f32.mrb[26].mxu0 }
 0xcb9   :  { %v791_v46 = vpop.f32.mrb[27].mxu0  ;;  %v2317_v48 = vmul.f32 -1.442695, %v795_v29 }
 0xcba   :  { %2532 = vtanh.f32 %v796_v44  ;;  %v2318_v55 = vmul.f32 -1.442695, %v796_v44  ;;  %v267_v46 = vadd.f32 %v3118_v3, %v3039_v23 }
 0xcbb   :  { %2534 = vpow2.f32 %v2317_v48 }
 0xcc4   :  { %v2533_v47 = vpop.eup %2532 }
 0xcc5   :  { %812 = vrot.lane.b32.xlu1 %v2533_v47, %s2837_s3  ;;  %v2535_v49 = vpop.eup %2534 }
 0xcc6   :  { %v803_v2 = vadd.f32 1.0, %v2535_v49 }
 0xcc8   :  { %2536 = vrcp.f32 %v803_v2 }
 0xcd2   :  { %v2537_v50 = vpop.eup %2536 }
 0xcd3   :  { %v810_v62 = vmul.f32 %v2537_v50, %v740_v32 }
 0xd37   :  { %v813_v61 = vpop.permute.xlu1 %812 }
 0xd38   :  { %v815_v51 = vmul.f32 %v2537_v50, %v813_v61 }
 0xd3a   :  { %817 = vrot.lane.b32.xlu0 %v815_v51, %s2837_s3 }
 0xdac   :  { %v818_v52 = vpop.permute.xlu0 %817 }
 0xdad   :  { %v820_v53 = vadd.f32 %v818_v52, %v810_v62  ;;  %v2446_v52 = vld [vmem:[#allocation7 + $0x4] ss:$8 sps:$4 sm:$0xff]  }
 0xdaf   :  { %2538 = vtanh.f32 %v820_v53 }
 0xdb0   :  { %2540 = vpow2.f32 %v2318_v55 }
 0xdb9   :  { %v2539_v54 = vpop.eup %2538 }
 0xdba   :  { %823 = vrot.lane.b32.xlu1 %v2539_v54, %s2837_s3  ;;  %v2541_v56 = vpop.eup %2540 }
 0xdbb   :  { %v804_v57 = vadd.f32 1.0, %v2541_v56 }
 0xdbd   :  { %2542 = vrcp.f32 %v804_v57 }
 0xdc7   :  { %v2543_v58 = vpop.eup %2542 }
 0xe2c   :  { %v824_v7 = vpop.permute.xlu1 %823 }
 0xe2d   :  { %v826_v9 = vmul.f32 %v2543_v58, %v824_v7 }
 0xe2f   :  { %827 = vst.msk [vmem:[#allocation3 + $0x28] sm:$0xff] %vm182_vm0, %v826_v9  ;;  %v828_v18 = vpack.c.bf16 %v826_v9, %v826_v9  ;;  %v2444_v9 = vld [vmem:[#allocation7] ss:$8 sps:$4 sm:$0xff]  }
 0xe31   :  { %2319 = vmatmul.mubr.msk.bf16.vlgmr.msra.gmra.mrb[16].mxu1 %vm182_vm0, %v828_v18 }
 0xe32   :  { %993 = vmatpush1.bf16.msra.mxu1 %v2965_v4  ;;  %1024 = vmatprep.mubr.bf16.mxu1 %v2836_v0 }
 0xe33   :  { %994 = vmatprep.subr.bf16.mxu1 %v2972_v6 }
 0xe36   :  { %995 = vmatpush1.bf16.msra.mxu1 %v2977_v8 }
 0xe37   :  { %996 = vmatprep.subr.bf16.mxu1 %v2983_v10 }
 0xe3a   :  { %997 = vmatpush1.bf16.msra.mxu1 %v2988_v12 }
 0xe3b   :  { %998 = vmatprep.subr.bf16.mxu1 %v2995_v14 }
 0xe3e   :  { %999 = vmatpush1.bf16.msra.mxu1 %v3000_v16 }
 0xe3f   :  { %1238 = vmatprep.subr.bf16.mxu1 %v2446_v52 }
 0xf04   :  { %v866_v26 = vpop.f32.mrb[16].mxu1 }
 0xf05   :  { %v875_v27 = vadd.f32 %v866_v26, %v263_v21  ;;  %v868_v59 = vpop.f32.mrb[17].mxu1  ;;  %v2449_v21 = vld [vmem:[#allocation7 + $0x14] ss:$8 sps:$4 sm:$0xff]   ;;  %v2452_v26 = vld [vmem:[#allocation7 + $0x24] ss:$8 sps:$4 sm:$0xff]  }
 0xf06   :  { %v876_v30 = vadd.f32 %v868_v59, %v265_v25  ;;  %v870_v60 = vpop.f32.mrb[18].mxu1  ;;  %v2447_v25 = vld [vmem:[#allocation7 + $0x10] ss:$8 sps:$4 sm:$0xff]   ;;  %v2455_v59 = vld [vmem:[#allocation7 + $0x34] ss:$8 sps:$4 sm:$0xff]  }
 0xf07   :  { %v871_v31 = vpop.f32.mrb[19].mxu1  ;;  %v2320_v33 = vmul.f32 -1.442695, %v875_v27  ;;  %v2450_v27 = vld [vmem:[#allocation7 + $0x20] ss:$8 sps:$4 sm:$0xff]   ;;  %v1149_v60 = vld [vmem:[#allocation3 + $0x8] sm:$0xff] }
 0xf08   :  { %2544 = vtanh.f32 %v876_v30  ;;  %v2321_v41 = vmul.f32 -1.442695, %v876_v30  ;;  %v2453_v30 = vld [vmem:[#allocation7 + $0x30] ss:$8 sps:$4 sm:$0xff]  }
 0xf09   :  { %2546 = vpow2.f32 %v2320_v33  ;;  %v1148_v31 = vld [vmem:[#allocation3] sm:$0xff]  ;;  %v1151_v33 = vld [vmem:[#allocation3 + $0x18] sm:$0xff] }
 0xf12   :  { %v2545_v32 = vpop.eup %2544 }
 0xf13   :  { %892 = vrot.lane.b32.xlu0 %v2545_v32, %s2837_s3  ;;  %v2547_v34 = vpop.eup %2546  ;;  %v1158_v32 = vpack.c.bf16 %v1149_v60, %v1148_v31 }
 0xf14   :  { %v883_v35 = vadd.f32 1.0, %v2547_v34  ;;  %v1150_v34 = vld [vmem:[#allocation3 + $0x10] sm:$0xff] }
 0xf16   :  { %2548 = vrcp.f32 %v883_v35  ;;  %v1159_v35 = vpack.c.bf16 %v1151_v33, %v1150_v34 }
 0xf20   :  { %v2549_v36 = vpop.eup %2548 }
 0xf21   :  { %v890_v1 = vmul.f32 %v2549_v36, %v820_v53 }
 0xf85   :  { %v893_v63 = vpop.permute.xlu0 %892 }
 0xf86   :  { %v895_v37 = vmul.f32 %v2549_v36, %v893_v63  ;;  %v1153_v36 = vld [vmem:[#allocation3 + $0x28] sm:$0xff]  ;;  %v1152_v63 = vld [vmem:[#allocation3 + $0x20] sm:$0xff] }
 0xf88   :  { %897 = vrot.lane.b32.xlu1 %v895_v37, %s2837_s3  ;;  %v1160_v37 = vpack.c.bf16 %v1153_v36, %v1152_v63  ;;  %v277_v36 = vadd.f32 %v3126_v15, %v3039_v23  ;;  %v279_v63 = vadd.f32 %v3128_v17, %v3043_v24 }
 0xffa   :  { %v898_v38 = vpop.permute.xlu1 %897 }
 0xffb   :  { %v900_v39 = vadd.f32 %v898_v38, %v890_v1 }
 0xffd   :  { %2550 = vtanh.f32 %v900_v39 }
 0xffe   :  { %2552 = vpow2.f32 %v2321_v41  ;;  %v275_v41 = vadd.f32 %v3124_v13, %v3043_v24 }
0x1007   :  { %v2551_v40 = vpop.eup %2550 }
0x1008   :  { %903 = vrot.lane.b32.xlu0 %v2551_v40, %s2837_s3  ;;  %v2553_v28 = vpop.eup %2552  ;;  %v273_v40 = vadd.f32 %v3122_v11, %v3039_v23 }
0x1009   :  { %v884_v42 = vadd.f32 1.0, %v2553_v28 }
0x100b   :  { %2554 = vrcp.f32 %v884_v42 }
0x1015   :  { %v2555_v29 = vpop.eup %2554 }
0x107a   :  { %v904_v43 = vpop.permute.xlu0 %903 }
0x107b   :  { %v906_v44 = vmul.f32 %v2555_v29, %v904_v43 }
0x107d   :  { %907 = vst.msk [vmem:[#allocation3 + $0x30] sm:$0xff] %vm182_vm0, %v906_v44  ;;  %v908_v45 = vpack.c.bf16 %v906_v44, %v906_v44 }
0x107f   :  { %2322 = vmatmul.mubr.msk.bf16.vlgmr.msra.gmra.mrb[28].mxu0 %vm182_vm0, %v908_v45 }
0x1080   :  { %1073 = vmatpush1.bf16.msra.mxu0 %v2965_v4  ;;  %1104 = vmatprep.mubr.bf16.mxu0 %v2836_v0  ;;  %v269_v4 = vadd.f32 %v3120_v5, %v3043_v24 }
0x1081   :  { %1074 = vmatprep.subr.bf16.mxu0 %v2972_v6 }
0x1084   :  { %1075 = vmatpush1.bf16.msra.mxu0 %v2977_v8  ;;  %v1154_v38 = vld [vmem:[#allocation3 + $0x30] sm:$0xff] }
0x1085   :  { %1076 = vmatprep.subr.bf16.mxu0 %v2983_v10 }
0x1088   :  { %1077 = vmatpush1.bf16.msra.mxu0 %v2988_v12 }
0x1089   :  { %1078 = vmatprep.subr.bf16.mxu0 %v2995_v14 }
0x108c   :  { %1079 = vmatpush1.bf16.msra.mxu0 %v3000_v16 }
0x1152   :  { %v946_v47 = vpop.f32.mrb[28].mxu0 }
0x1153   :  { %v955_v48 = vadd.f32 %v946_v47, %v267_v46  ;;  %v948_v49 = vpop.f32.mrb[29].mxu0 }
0x1154   :  { %v956_v6 = vadd.f32 %v948_v49, %v269_v4  ;;  %v950_v2 = vpop.f32.mrb[30].mxu0 }
0x1155   :  { %v951_v8 = vpop.f32.mrb[31].mxu0  ;;  %v2323_v12 = vmul.f32 -1.442695, %v955_v48 }
0x1156   :  { %2556 = vtanh.f32 %v956_v6  ;;  %v2324_v54 = vmul.f32 -1.442695, %v956_v6 }
0x1157   :  { %2558 = vpow2.f32 %v2323_v12 }
0x1160   :  { %v2557_v10 = vpop.eup %2556 }
0x1161   :  { %972 = vrot.lane.b32.xlu1 %v2557_v10, %s2837_s3  ;;  %v2559_v14 = vpop.eup %2558 }
0x1162   :  { %v963_v16 = vadd.f32 1.0, %v2559_v14 }
0x1164   :  { %2560 = vrcp.f32 %v963_v16 }
0x116e   :  { %v2561_v50 = vpop.eup %2560 }
0x116f   :  { %v970_v5 = vmul.f32 %v2561_v50, %v900_v39 }
0x11d3   :  { %v973_v3 = vpop.permute.xlu1 %972 }
0x11d4   :  { %v975_v61 = vmul.f32 %v2561_v50, %v973_v3 }
0x11d6   :  { %977 = vrot.lane.b32.xlu0 %v975_v61, %s2837_s3 }
0x1248   :  { %v978_v51 = vpop.permute.xlu0 %977 }
0x1249   :  { %v3217_v62 = vadd.f32 %v978_v51, %v970_v5 }
0x124b   :  { %2562 = vtanh.f32 %v3217_v62 }
0x124c   :  { %2564 = vpow2.f32 %v2324_v54 }
0x1255   :  { %v2563_v53 = vpop.eup %2562 }
0x1256   :  { %983 = vrot.lane.b32.xlu1 %v2563_v53, %s2837_s3  ;;  %v2565_v55 = vpop.eup %2564 }
0x1257   :  { %v964_v56 = vadd.f32 1.0, %v2565_v55 }
0x1259   :  { %2566 = vrcp.f32 %v964_v56 }
0x1263   :  { %v2567_v57 = vpop.eup %2566 }
0x12c8   :  { %v984_v58 = vpop.permute.xlu1 %983 }
0x12c9   :  { %v986_v7 = vmul.f32 %v2567_v57, %v984_v58 }
0x12cb   :  { %987 = vst.msk [vmem:[#allocation3 + $0x38] sm:$0xff] %vm182_vm0, %v986_v7  ;;  %v988_v18 = vpack.c.bf16 %v986_v7, %v986_v7  ;;  %v3274_v7 = vld [vmem:[#allocation9 + $0x4] ss:$8 sps:$4 sm:$0xff]  }
0x12cc   :  { %1389 = vmatprep.subr.bf16.mxu0 %v3274_v7 }
0x12cd   :  { %2325 = vmatmul.mubr.msk.bf16.vlgmr.msra.gmra.mrb[20].mxu1 %vm182_vm0, %v988_v18  ;;  %v3280_v18 = vld [vmem:[#allocation9 + $0x14] ss:$8 sps:$4 sm:$0xff]  }
0x12ce   :  { %1239 = vmatpush1.bf16.msra.mxu1 %v2444_v9  ;;  %1270 = vmatprep.mubr.bf16.mxu1 %v2836_v0  ;;  %v3276_v9 = vld [vmem:[#allocation9] ss:$8 sps:$4 sm:$0xff]  }
0x12cf   :  { %1240 = vmatprep.subr.bf16.mxu1 %v2449_v21  ;;  %v3283_v21 = vld [vmem:[#allocation9 + $0x10] ss:$8 sps:$4 sm:$0xff]  }
0x12d2   :  { %1241 = vmatpush1.bf16.msra.mxu1 %v2447_v25  ;;  %v1155_v1 = vld [vmem:[#allocation3 + $0x38] sm:$0xff] }
0x12d3   :  { %1242 = vmatprep.subr.bf16.mxu1 %v2452_v26  ;;  %v1161_v39 = vpack.c.bf16 %v1155_v1, %v1154_v38  ;;  %v3289_v25 = vld [vmem:[#allocation9 + $0x20] ss:$8 sps:$4 sm:$0xff]  }
0x12d6   :  { %1243 = vmatpush1.bf16.msra.mxu1 %v2450_v27  ;;  %v3293_v27 = vld [vmem:[#allocation9 + $0x34] ss:$8 sps:$4 sm:$0xff]  }
0x12d7   :  { %1244 = vmatprep.subr.bf16.mxu1 %v2455_v59  ;;  %v3296_v59 = vld [vmem:[#allocation9 + $0x30] ss:$8 sps:$4 sm:$0xff]  }
0x12da   :  { %1245 = vmatpush1.bf16.msra.mxu1 %v2453_v30 }
0x12db   :  { %1626 = vmatprep.subr.bf16.mxu1 %v3274_v7 }
0x12dd   :  { %2339 = vmatmul.mubr.msk.bf16.vlgmr.msra.gmra.mrb[24].mxu1 %vm182_vm0, %v1158_v32 }
0x12de   :  { %1280 = vmatprep.mubr.bf16.mxu1 %v2836_v0  ;;  %1627 = vmatpush1.bf16.msra.mxu1 %v3276_v9 }
0x12df   :  { %1628 = vmatprep.subr.bf16.mxu1 %v3280_v18 }
0x12e2   :  { %1629 = vmatpush1.bf16.msra.mxu1 %v3283_v21 }
0x12e5   :  { %2340 = vmatmul.mubr.msk.bf16.gmra.mrb[28].mxu1 %vm182_vm0, %v1159_v35 }
0x12e6   :  { %1290 = vmatprep.mubr.bf16.mxu1 %v2836_v0 }
0x12ed   :  { %2341 = vmatmul.mubr.msk.bf16.gmra.mrb[32].mxu1 %vm182_vm0, %v1160_v37 }
0x12ee   :  { %1300 = vmatprep.mubr.bf16.mxu1 %v2836_v0 }
0x12f5   :  { %2342 = vmatmul.mubr.msk.bf16.gmra.mrb[36].mxu1 %vm182_vm0, %v1161_v39 }
0x12f6   :  { %1310 = vmatprep.mubr.bf16.mxu1 %v2836_v0 }
0x13a0   :  { %v1026_v28 = vpop.f32.mrb[20].mxu1 }
0x13a1   :  { %v1035_v42 = vadd.f32 %v1026_v28, %v273_v40  ;;  %v1028_v29 = vpop.f32.mrb[21].mxu1  ;;  %v1171_v28 = vld [vmem:[#allocation10] sm:$0x3] }
0x13a2   :  { %v1036_v43 = vadd.f32 %v1028_v29, %v275_v41  ;;  %v1030_v44 = vpop.f32.mrb[22].mxu1  ;;  %v3336_v29 = vrot.slane %v1171_v28, %v113_v22 }
0x13a3   :  { %v1031_v45 = vpop.f32.mrb[23].mxu1  ;;  %v2326_v5 = vmul.f32 -1.442695, %v1035_v42  ;;  %v3332_v42 = vrot.slane %v1171_v28, %v109_v20 }
0x13a4   :  { %2568 = vtanh.f32 %v1036_v43  ;;  %v2327_v30 = vmul.f32 -1.442695, %v1036_v43 }
0x13a5   :  { %2570 = vpow2.f32 %v2326_v5 }
0x13ae   :  { %v2569_v46 = vpop.eup %2568 }
0x13af   :  { %1052 = vrot.lane.b32.xlu0 %v2569_v46, %s2837_s3  ;;  %v2571_v51 = vpop.eup %2570 }
0x13b0   :  { %v3237_v4 = vpop.f32.mrb[24].mxu1  ;;  %v1043_v52 = vadd.f32 1.0, %v2571_v51 }
0x13b1   :  { %v3239_v47 = vpop.f32.mrb[25].mxu1  ;;  %v1273_v23 = vadd.f32 %v3237_v4, %v3332_v42 }
0x13b2   :  { %v3241_v48 = vpop.f32.mrb[26].mxu1  ;;  %2572 = vrcp.f32 %v1043_v52  ;;  %v1275_v24 = vadd.f32 %v3239_v47, %v3336_v29 }
0x13b3   :  { %v3243_v11 = vpop.f32.mrb[27].mxu1 }
0x13b8   :  { %v3245_v49 = vpop.f32.mrb[28].mxu1 }
0x13b9   :  { %v3247_v13 = vpop.f32.mrb[29].mxu1 }
0x13ba   :  { %v3249_v6 = vpop.f32.mrb[30].mxu1 }
0x13bb   :  { %v3251_v2 = vpop.f32.mrb[31].mxu1 }
0x13bc   :  { %v2573_v53 = vpop.eup %2572 }
0x13bd   :  { %v1050_v56 = vmul.f32 %v2573_v53, %v3217_v62  ;;  %v3286_v62 = vld [vmem:[#allocation9 + $0x24] ss:$8 sps:$4 sm:$0xff]  }
0x13be   :  { %1630 = vmatprep.subr.bf16.mxu1 %v3286_v62 }
0x13bf   :  { %1631 = vmatpush1.bf16.msra.mxu1 %v3289_v25 }
0x13c0   :  { %v3253_v8 = vpop.f32.mrb[32].mxu1  ;;  %1632 = vmatprep.subr.bf16.mxu1 %v3293_v27 }
0x13c1   :  { %v3255_v10 = vpop.f32.mrb[33].mxu1 }
0x13c2   :  { %v3257_v12 = vpop.f32.mrb[34].mxu1 }
0x13c3   :  { %v3259_v14 = vpop.f32.mrb[35].mxu1  ;;  %1633 = vmatpush1.bf16.msra.mxu1 %v3296_v59 }
0x13c4   :  { %1784 = vmatprep.subr.bf16.mxu1 %v3274_v7 }
0x13c8   :  { %v3261_v16 = vpop.f32.mrb[36].mxu1 }
0x13c9   :  { %v3263_v50 = vpop.f32.mrb[37].mxu1 }
0x13ca   :  { %v3265_v3 = vpop.f32.mrb[38].mxu1 }
0x13cb   :  { %v3267_v61 = vpop.f32.mrb[39].mxu1 }
0x1421   :  { %v1053_v54 = vpop.permute.xlu0 %1052 }
0x1422   :  { %v1055_v55 = vmul.f32 %v2573_v53, %v1053_v54 }
0x1424   :  { %1057 = vrot.lane.b32.xlu1 %v1055_v55, %s2837_s3 }
0x1496   :  { %v1058_v57 = vpop.permute.xlu1 %1057 }
0x1497   :  { %v3271_v58 = vadd.f32 %v1058_v57, %v1050_v56 }
0x1499   :  { %2574 = vtanh.f32 %v3271_v58 }
0x149a   :  { %2576 = vpow2.f32 %v2327_v30 }
0x14a3   :  { %v2575_v26 = vpop.eup %2574 }
0x14a4   :  { %1063 = vrot.lane.b32.xlu0 %v2575_v26, %s2837_s3  ;;  %v2577_v60 = vpop.eup %2576 }
0x14a5   :  { %v1044_v31 = vadd.f32 1.0, %v2577_v60 }
0x14a7   :  { %2578 = vrcp.f32 %v1044_v31 }
0x14b1   :  { %v2579_v32 = vpop.eup %2578 }
0x1516   :  { %v1064_v33 = vpop.permute.xlu0 %1063 }
0x1517   :  { %v1066_v34 = vmul.f32 %v2579_v32, %v1064_v33  ;;  %v1277_v33 = vadd.f32 %v3241_v48, %v3332_v42 }
0x1519   :  { %1067 = vst.msk [vmem:[#allocation3 + $0x40] sm:$0xff] %vm182_vm0, %v1066_v34  ;;  %v1068_v35 = vpack.c.bf16 %v1066_v34, %v1066_v34  ;;  %v1279_v34 = vadd.f32 %v3243_v11, %v3336_v29 }
0x151b   :  { %2328 = vmatmul.mubr.msk.bf16.vlgmr.msra.gmra.mrb[32].mxu0 %vm182_vm0, %v1068_v35 }
0x151c   :  { %1390 = vmatpush1.bf16.msra.mxu0 %v3276_v9  ;;  %1421 = vmatprep.mubr.bf16.mxu0 %v2836_v0 }
0x151d   :  { %1391 = vmatprep.subr.bf16.mxu0 %v3280_v18 }
0x1520   :  { %1392 = vmatpush1.bf16.msra.mxu0 %v3283_v21 }
0x1521   :  { %1393 = vmatprep.subr.bf16.mxu0 %v3286_v62 }
0x1524   :  { %1394 = vmatpush1.bf16.msra.mxu0 %v3289_v25 }
0x1525   :  { %1395 = vmatprep.subr.bf16.mxu0 %v3293_v27 }
0x1528   :  { %1396 = vmatpush1.bf16.msra.mxu0 %v3296_v59 }
0x1529   :  { %1468 = vmatprep.subr.bf16.mxu0 %v3274_v7 }
0x152b   :  { %1422 = vmatmul.mubr.bf16.vlgmr.msra.gmra.mrb[36].mxu0 %v2836_v0 }
0x152c   :  { %1469 = vmatpush1.bf16.msra.mxu0 %v3276_v9  ;;  %1500 = vmatprep.mubr.bf16.mxu0 %v2836_v0 }
0x152d   :  { %1470 = vmatprep.subr.bf16.mxu0 %v3280_v18 }
0x1530   :  { %1471 = vmatpush1.bf16.msra.mxu0 %v3283_v21 }
0x1531   :  { %1472 = vmatprep.subr.bf16.mxu0 %v3286_v62 }
0x1534   :  { %1473 = vmatpush1.bf16.msra.mxu0 %v3289_v25 }
0x1535   :  { %1474 = vmatprep.subr.bf16.mxu0 %v3293_v27 }
0x1538   :  { %1475 = vmatpush1.bf16.msra.mxu0 %v3296_v59 }
0x1539   :  { %1547 = vmatprep.subr.bf16.mxu0 %v3274_v7 }
0x15ee   :  { %v1106_v37 = vpop.f32.mrb[32].mxu0 }
0x15ef   :  { %v3326_v1 = vadd.f32 %v1106_v37, %v277_v36  ;;  %v1108_v38 = vpop.f32.mrb[33].mxu0 }
0x15f0   :  { %v3328_v39 = vadd.f32 %v1108_v38, %v279_v63  ;;  %v1110_v40 = vpop.f32.mrb[34].mxu0 }
0x15f1   :  { %v1111_v41 = vpop.f32.mrb[35].mxu0 }
0x15fe   :  { %v1423_v15 = vpop.f32.mrb[36].mxu0 }
0x15ff   :  { %v1432_v17 = vadd.f32 %v1423_v15, %v1273_v23  ;;  %v1425_v43 = vpop.f32.mrb[37].mxu0 }
0x1600   :  { %v1433_v44 = vadd.f32 %v1425_v43, %v1275_v24  ;;  %v1427_v45 = vpop.f32.mrb[38].mxu0  ;;  %v2329_v43 = vmul.f32 -1.442695, %v3326_v1 }
0x1601   :  { %v1428_v46 = vpop.f32.mrb[39].mxu0  ;;  %v2352_v20 = vmul.f32 -1.442695, %v1432_v17 }
0x1602   :  { %2580 = vtanh.f32 %v1433_v44  ;;  %v2353_v56 = vmul.f32 -1.442695, %v1433_v44 }
0x1603   :  { %2582 = vpow2.f32 %v2352_v20 }
0x160c   :  { %v2581_v5 = vpop.eup %2580 }
0x160d   :  { %1449 = vrot.lane.b32.xlu1 %v2581_v5, %s2837_s3  ;;  %v2583_v19 = vpop.eup %2582 }
0x160e   :  { %v1440_v22 = vadd.f32 1.0, %v2583_v19 }
0x1610   :  { %2584 = vrcp.f32 %v1440_v22 }
0x161a   :  { %v2585_v51 = vpop.eup %2584 }
0x161b   :  { %v1447_v47 = vmul.f32 0.0, %v2585_v51 }
0x167f   :  { %v1450_v4 = vpop.permute.xlu1 %1449 }
0x1680   :  { %v1452_v52 = vmul.f32 %v2585_v51, %v1450_v4 }
0x1682   :  { %1454 = vrot.lane.b32.xlu0 %v1452_v52, %s2837_s3 }
0x16f4   :  { %v1455_v53 = vpop.permute.xlu0 %1454 }
0x16f5   :  { %v1457_v54 = vadd.f32 %v1455_v53, %v1447_v47 }
0x16f7   :  { %2586 = vtanh.f32 %v1457_v54 }
0x16f8   :  { %2588 = vpow2.f32 %v2353_v56 }
0x1701   :  { %v2587_v55 = vpop.eup %2586 }
0x1702   :  { %1460 = vrot.lane.b32.xlu1 %v2587_v55, %s2837_s3  ;;  %v2589_v57 = vpop.eup %2588 }
0x1703   :  { %v1441_v26 = vadd.f32 1.0, %v2589_v57 }
0x1705   :  { %2590 = vrcp.f32 %v1441_v26 }
0x170f   :  { %v2591_v30 = vpop.eup %2590 }
0x1774   :  { %v1461_v60 = vpop.permute.xlu1 %1460 }
0x1775   :  { %v1463_v31 = vmul.f32 %v2591_v30, %v1461_v60 }
0x1777   :  { %v1464_v32 = vpack.c.bf16 %v1463_v31, %v1463_v31 }
0x1779   :  { %2354 = vmatmul.mubr.msk.bf16.vlgmr.msra.gmra.mrb[40].mxu0 %vm182_vm0, %v1464_v32 }
0x177a   :  { %1548 = vmatpush1.bf16.msra.mxu0 %v3276_v9  ;;  %1579 = vmatprep.mubr.bf16.mxu0 %v2836_v0 }
0x177b   :  { %1549 = vmatprep.subr.bf16.mxu0 %v3280_v18 }
0x177e   :  { %1550 = vmatpush1.bf16.msra.mxu0 %v3283_v21 }
0x177f   :  { %1551 = vmatprep.subr.bf16.mxu0 %v3286_v62 }
0x1782   :  { %1552 = vmatpush1.bf16.msra.mxu0 %v3289_v25 }
0x1783   :  { %1553 = vmatprep.subr.bf16.mxu0 %v3293_v27 }
0x1786   :  { %1554 = vmatpush1.bf16.msra.mxu0 %v3296_v59 }
0x1787   :  { %1705 = vmatprep.subr.bf16.mxu0 %v3274_v7 }
0x184c   :  { %v1502_v35 = vpop.f32.mrb[40].mxu0 }
0x184d   :  { %v1511_v36 = vadd.f32 %v1502_v35, %v1277_v33  ;;  %v1504_v63 = vpop.f32.mrb[41].mxu0 }
0x184e   :  { %v1512_v37 = vadd.f32 %v1504_v63, %v1279_v34  ;;  %v1506_v38 = vpop.f32.mrb[42].mxu0 }
0x184f   :  { %v1507_v40 = vpop.f32.mrb[43].mxu0  ;;  %v2355_v28 = vmul.f32 -1.442695, %v1511_v36  ;;  %v1156_v36 = vld [vmem:[#allocation3 + $0x40] sm:$0xff]  ;;  %v1283_v38 = vadd.f32 %v3245_v49, %v3332_v42 }
0x1850   :  { %2592 = vtanh.f32 %v1512_v37  ;;  %v2356_v52 = vmul.f32 -1.442695, %v1512_v37 }
0x1851   :  { %2594 = vpow2.f32 %v2355_v28 }
0x185a   :  { %v2593_v41 = vpop.eup %2592 }
0x185b   :  { %1528 = vrot.lane.b32.xlu0 %v2593_v41, %s2837_s3  ;;  %v2595_v23 = vpop.eup %2594 }
0x185c   :  { %v1519_v24 = vadd.f32 1.0, %v2595_v23 }
0x185e   :  { %2596 = vrcp.f32 %v1519_v24 }
0x185f   :  { %2598 = vtanh.f32 %v3328_v39 }
0x1860   :  { %2600 = vpow2.f32 %v2329_v43 }
0x1868   :  { %v2597_v48 = vpop.eup %2596 }
0x1869   :  { %v2599_v17 = vpop.eup %2598  ;;  %v1526_v46 = vmul.f32 %v2597_v48, %v1457_v54 }
0x186a   :  { %v2601_v44 = vpop.eup %2600 }
0x186b   :  { %v1123_v45 = vadd.f32 1.0, %v2601_v44 }
0x186d   :  { %2602 = vrcp.f32 %v1123_v45 }
0x1877   :  { %v2603_v19 = vpop.eup %2602 }
0x1878   :  { %v1130_v53 = vmul.f32 %v2603_v19, %v3271_v58  ;;  %v2330_v58 = vmul.f32 -1.442695, %v3328_v39  ;;  %v1285_v39 = vadd.f32 %v3247_v13, %v3336_v29 }
0x18cd   :  { %v1529_v15 = vpop.permute.xlu0 %1528 }
0x18ce   :  { %v1531_v11 = vmul.f32 %v2597_v48, %v1529_v15 }
0x18d0   :  { %1533 = vrot.lane.b32.xlu1 %v1531_v11, %s2837_s3 }
0x18d4   :  { %1132 = vrot.lane.b32.xlu1 %v2599_v17, %s2837_s3 }
0x1942   :  { %v1534_v5 = vpop.permute.xlu1 %1533 }
0x1943   :  { %v3364_v20 = vadd.f32 %v1534_v5, %v1526_v46 }
0x1945   :  { %2604 = vtanh.f32 %v3364_v20 }
0x1946   :  { %v1133_v22 = vpop.permute.xlu1 %1132  ;;  %2606 = vpow2.f32 %v2356_v52 }
0x1947   :  { %v1135_v51 = vmul.f32 %v2603_v19, %v1133_v22 }
0x1949   :  { %1137 = vrot.lane.b32.xlu1 %v1135_v51, %s2837_s3 }
0x194f   :  { %v2605_v4 = vpop.eup %2604 }
0x1950   :  { %1539 = vrot.lane.b32.xlu0 %v2605_v4, %s2837_s3  ;;  %v2607_v1 = vpop.eup %2606 }
0x1951   :  { %v1520_v47 = vadd.f32 1.0, %v2607_v1 }
0x1953   :  { %2608 = vrcp.f32 %v1520_v47 }
0x195d   :  { %v2609_v56 = vpop.eup %2608 }
0x19bb   :  { %v1138_v54 = vpop.permute.xlu1 %1137 }
0x19bc   :  { %v1140_v55 = vadd.f32 %v1138_v54, %v1130_v53 }
0x19be   :  { %2610 = vtanh.f32 %v1140_v55 }
0x19bf   :  { %2612 = vpow2.f32 %v2330_v58 }
0x19c2   :  { %v1540_v57 = vpop.permute.xlu0 %1539 }
0x19c3   :  { %v1542_v26 = vmul.f32 %v2609_v56, %v1540_v57 }
0x19c5   :  { %v1543_v30 = vpack.c.bf16 %v1542_v26, %v1542_v26  ;;  %v1289_v26 = vadd.f32 %v3251_v2, %v3336_v29 }
0x19c7   :  { %2357 = vmatmul.mubr.msk.bf16.vlgmr.msra.gmra.mrb[44].mxu0 %vm182_vm0, %v1543_v30 }
0x19c8   :  { %v2611_v60 = vpop.eup %2610  ;;  %1706 = vmatpush1.bf16.msra.mxu0 %v3276_v9  ;;  %1737 = vmatprep.mubr.bf16.mxu0 %v2836_v0 }
0x19c9   :  { %1143 = vrot.lane.b32.xlu1 %v2611_v60, %s2837_s3  ;;  %1707 = vmatprep.subr.bf16.mxu0 %v3280_v18  ;;  %v2613_v31 = vpop.eup %2612 }
0x19ca   :  { %v1124_v32 = vadd.f32 1.0, %v2613_v31 }
0x19cc   :  { %1708 = vmatpush1.bf16.msra.mxu0 %v3283_v21  ;;  %2614 = vrcp.f32 %v1124_v32 }
0x19cd   :  { %1709 = vmatprep.subr.bf16.mxu0 %v3286_v62 }
0x19d0   :  { %1710 = vmatpush1.bf16.msra.mxu0 %v3289_v25 }
0x19d1   :  { %1711 = vmatprep.subr.bf16.mxu0 %v3293_v27 }
0x19d4   :  { %1712 = vmatpush1.bf16.msra.mxu0 %v3296_v59 }
0x19d5   :  { %1863 = vmatprep.subr.bf16.mxu0 %v3274_v7 }
0x19d6   :  { %v2615_v33 = vpop.eup %2614 }
0x1a3b   :  { %v1144_v34 = vpop.permute.xlu1 %1143 }
0x1a3c   :  { %v1146_v35 = vmul.f32 %v2615_v33, %v1144_v34 }
0x1a3e   :  { %1147 = vst.msk [vmem:[#allocation3 + $0x48] sm:$0xff] %vm182_vm0, %v1146_v35 }
0x1a45   :  { %v1157_v63 = vld [vmem:[#allocation3 + $0x48] sm:$0xff] }
0x1a46   :  { %v1162_v37 = vpack.c.bf16 %v1157_v63, %v1156_v36 }
0x1a48   :  { %2343 = vmatmul.mubr.msk.bf16.gmra.mrb[40].mxu1 %vm182_vm0, %v1162_v37 }
0x1a49   :  { %1658 = vmatprep.mubr.bf16.mxu1 %v2836_v0 }
0x1a9a   :  { %v1581_v40 = vpop.f32.mrb[44].mxu0 }
0x1a9b   :  { %v1590_v41 = vadd.f32 %v1581_v40, %v1283_v38  ;;  %v1583_v28 = vpop.f32.mrb[45].mxu0 }
0x1a9c   :  { %v1591_v23 = vadd.f32 %v1583_v28, %v1285_v39  ;;  %v1585_v24 = vpop.f32.mrb[46].mxu0 }
0x1a9d   :  { %v1586_v48 = vpop.f32.mrb[47].mxu0  ;;  %v2358_v11 = vmul.f32 -1.442695, %v1590_v41 }
0x1a9e   :  { %2616 = vtanh.f32 %v1591_v23  ;;  %v2359_v1 = vmul.f32 -1.442695, %v1591_v23 }
0x1a9f   :  { %2618 = vpow2.f32 %v2358_v11 }
0x1aa8   :  { %v2617_v15 = vpop.eup %2616 }
0x1aa9   :  { %1607 = vrot.lane.b32.xlu0 %v2617_v15, %s2837_s3  ;;  %v2619_v17 = vpop.eup %2618 }
0x1aaa   :  { %v1598_v43 = vadd.f32 1.0, %v2619_v17 }
0x1aac   :  { %2620 = vrcp.f32 %v1598_v43  ;;  %v1293_v43 = vadd.f32 %v3253_v8, %v3332_v42 }
0x1ab6   :  { %v2621_v44 = vpop.eup %2620 }
0x1ab7   :  { %v1605_v22 = vmul.f32 %v2621_v44, %v3364_v20  ;;  %v1287_v20 = vadd.f32 %v3249_v6, %v3332_v42 }
0x1b1b   :  { %v3390_v49 = vpop.f32.mrb[40].mxu1  ;;  %v1608_v45 = vpop.permute.xlu0 %1607 }
0x1b1c   :  { %v1610_v13 = vmul.f32 %v2621_v44, %v1608_v45  ;;  %v3392_v46 = vpop.f32.mrb[41].mxu1  ;;  %v1295_v44 = vadd.f32 %v3255_v10, %v3336_v29 }
0x1b1d   :  { %v3394_v5 = vpop.f32.mrb[42].mxu1 }
0x1b1e   :  { %v3396_v19 = vpop.f32.mrb[43].mxu1  ;;  %1612 = vrot.lane.b32.xlu0 %v1610_v13, %s2837_s3 }
0x1b90   :  { %v1613_v51 = vpop.permute.xlu0 %1612 }
0x1b91   :  { %v1615_v4 = vadd.f32 %v1613_v51, %v1605_v22 }
0x1b93   :  { %2622 = vtanh.f32 %v1615_v4 }
0x1b94   :  { %2624 = vpow2.f32 %v2359_v1 }
0x1b9d   :  { %v2623_v52 = vpop.eup %2622 }
0x1b9e   :  { %1618 = vrot.lane.b32.xlu0 %v2623_v52, %s2837_s3  ;;  %v2625_v47 = vpop.eup %2624 }
0x1b9f   :  { %v1599_v53 = vadd.f32 1.0, %v2625_v47 }
0x1ba1   :  { %2626 = vrcp.f32 %v1599_v53 }
0x1bab   :  { %v2627_v54 = vpop.eup %2626 }
0x1c10   :  { %v1619_v55 = vpop.permute.xlu0 %1618 }
0x1c11   :  { %v1621_v56 = vmul.f32 %v2627_v54, %v1619_v55 }
0x1c13   :  { %v1622_v57 = vpack.c.bf16 %v1621_v56, %v1621_v56 }
0x1c15   :  { %2360 = vmatmul.mubr.msk.bf16.vlgmr.msra.gmra.mrb[44].mxu1 %vm182_vm0, %v1622_v57 }
0x1c16   :  { %1785 = vmatpush1.bf16.msra.mxu1 %v3276_v9  ;;  %1816 = vmatprep.mubr.bf16.mxu1 %v2836_v0 }
0x1c17   :  { %1786 = vmatprep.subr.bf16.mxu1 %v3280_v18 }
0x1c1a   :  { %1787 = vmatpush1.bf16.msra.mxu1 %v3283_v21 }
0x1c1b   :  { %1788 = vmatprep.subr.bf16.mxu1 %v3286_v62 }
0x1c1e   :  { %1789 = vmatpush1.bf16.msra.mxu1 %v3289_v25 }
0x1c1f   :  { %1790 = vmatprep.subr.bf16.mxu1 %v3293_v27 }
0x1c22   :  { %1791 = vmatpush1.bf16.msra.mxu1 %v3296_v59 }
0x1c23   :  { %1942 = vmatprep.subr.bf16.mxu1 %v3274_v7 }
0x1ce8   :  { %v1660_v30 = vpop.f32.mrb[44].mxu1 }
0x1ce9   :  { %v1669_v60 = vadd.f32 %v1660_v30, %v1287_v20  ;;  %v1662_v58 = vpop.f32.mrb[45].mxu1 }
0x1cea   :  { %v1670_v31 = vadd.f32 %v1662_v58, %v1289_v26  ;;  %v1664_v32 = vpop.f32.mrb[46].mxu1 }
0x1ceb   :  { %v1665_v33 = vpop.f32.mrb[47].mxu1  ;;  %v2361_v35 = vmul.f32 -1.442695, %v1669_v60 }
0x1cec   :  { %2628 = vtanh.f32 %v1670_v31  ;;  %v2362_v28 = vmul.f32 -1.442695, %v1670_v31 }
0x1ced   :  { %2630 = vpow2.f32 %v2361_v35  ;;  %v1297_v35 = vadd.f32 %v3257_v12, %v3332_v42 }
0x1cf6   :  { %v2629_v34 = vpop.eup %2628 }
0x1cf7   :  { %1686 = vrot.lane.b32.xlu1 %v2629_v34, %s2837_s3  ;;  %v2631_v36 = vpop.eup %2630 }
0x1cf8   :  { %v1677_v63 = vadd.f32 1.0, %v2631_v36  ;;  %v1299_v36 = vadd.f32 %v3259_v14, %v3336_v29 }
0x1cfa   :  { %2632 = vrcp.f32 %v1677_v63 }
0x1d04   :  { %v2633_v37 = vpop.eup %2632 }
0x1d05   :  { %v1684_v2 = vmul.f32 %v2633_v37, %v1615_v4 }
0x1d69   :  { %v1687_v6 = vpop.permute.xlu1 %1686 }
0x1d6a   :  { %v1689_v38 = vmul.f32 %v2633_v37, %v1687_v6 }
0x1d6c   :  { %1691 = vrot.lane.b32.xlu0 %v1689_v38, %s2837_s3 }
0x1dde   :  { %v1692_v39 = vpop.permute.xlu0 %1691 }
0x1ddf   :  { %v1694_v40 = vadd.f32 %v1692_v39, %v1684_v2 }
0x1de1   :  { %2634 = vtanh.f32 %v1694_v40 }
0x1de2   :  { %2636 = vpow2.f32 %v2362_v28 }
0x1deb   :  { %v2635_v41 = vpop.eup %2634 }
0x1dec   :  { %1697 = vrot.lane.b32.xlu1 %v2635_v41, %s2837_s3  ;;  %v2637_v23 = vpop.eup %2636 }
0x1ded   :  { %v1678_v24 = vadd.f32 1.0, %v2637_v23 }
0x1def   :  { %2638 = vrcp.f32 %v1678_v24 }
0x1df9   :  { %v2639_v48 = vpop.eup %2638 }
0x1e5e   :  { %v1698_v15 = vpop.permute.xlu1 %1697 }
0x1e5f   :  { %v1700_v11 = vmul.f32 %v2639_v48, %v1698_v15 }
0x1e61   :  { %v1701_v17 = vpack.c.bf16 %v1700_v11, %v1700_v11 }
0x1e63   :  { %2363 = vmatmul.mubr.msk.bf16.vlgmr.msra.gmra.mrb[48].mxu0 %vm182_vm0, %v1701_v17 }
0x1e64   :  { %1864 = vmatpush1.bf16.msra.mxu0 %v3276_v9  ;;  %1895 = vmatprep.mubr.bf16.mxu0 %v2836_v0 }
0x1e65   :  { %1865 = vmatprep.subr.bf16.mxu0 %v3280_v18 }
0x1e68   :  { %1866 = vmatpush1.bf16.msra.mxu0 %v3283_v21 }
0x1e69   :  { %1867 = vmatprep.subr.bf16.mxu0 %v3286_v62 }
0x1e6c   :  { %1868 = vmatpush1.bf16.msra.mxu0 %v3289_v25 }
0x1e6d   :  { %1869 = vmatprep.subr.bf16.mxu0 %v3293_v27 }
0x1e70   :  { %1870 = vmatpush1.bf16.msra.mxu0 %v3296_v59 }
0x1e71   :  { %2021 = vmatprep.subr.bf16.mxu0 %v3274_v7 }
0x1f36   :  { %v1739_v45 = vpop.f32.mrb[48].mxu0 }
0x1f37   :  { %v1748_v13 = vadd.f32 %v1739_v45, %v1293_v43  ;;  %v1741_v22 = vpop.f32.mrb[49].mxu0 }
0x1f38   :  { %v1749_v51 = vadd.f32 %v1741_v22, %v1295_v44  ;;  %v1743_v4 = vpop.f32.mrb[50].mxu0 }
0x1f39   :  { %v1744_v52 = vpop.f32.mrb[51].mxu0  ;;  %v2364_v47 = vmul.f32 -1.442695, %v1748_v13  ;;  %v1303_v4 = vadd.f32 %v3261_v16, %v3332_v42 }
0x1f3a   :  { %2640 = vtanh.f32 %v1749_v51  ;;  %v2365_v30 = vmul.f32 -1.442695, %v1749_v51  ;;  %v1305_v52 = vadd.f32 %v3263_v50, %v3336_v29 }
0x1f3b   :  { %2642 = vpow2.f32 %v2364_v47 }
0x1f44   :  { %v2641_v1 = vpop.eup %2640 }
0x1f45   :  { %1765 = vrot.lane.b32.xlu0 %v2641_v1, %s2837_s3  ;;  %v2643_v53 = vpop.eup %2642 }
0x1f46   :  { %v1756_v54 = vadd.f32 1.0, %v2643_v53 }
0x1f48   :  { %2644 = vrcp.f32 %v1756_v54 }
0x1f52   :  { %v2645_v55 = vpop.eup %2644 }
0x1f53   :  { %v1763_v10 = vmul.f32 %v2645_v55, %v1694_v40 }
0x1fb7   :  { %v1766_v8 = vpop.permute.xlu0 %1765 }
0x1fb8   :  { %v1768_v56 = vmul.f32 %v2645_v55, %v1766_v8 }
0x1fba   :  { %1770 = vrot.lane.b32.xlu1 %v1768_v56, %s2837_s3 }
0x202c   :  { %v1771_v57 = vpop.permute.xlu1 %1770 }
0x202d   :  { %v1773_v20 = vadd.f32 %v1771_v57, %v1763_v10 }
0x202f   :  { %2646 = vtanh.f32 %v1773_v20 }
0x2030   :  { %2648 = vpow2.f32 %v2365_v30 }
0x2039   :  { %v2647_v26 = vpop.eup %2646 }
0x203a   :  { %1776 = vrot.lane.b32.xlu0 %v2647_v26, %s2837_s3  ;;  %v2649_v60 = vpop.eup %2648 }
0x203b   :  { %v1757_v58 = vadd.f32 1.0, %v2649_v60 }
0x203d   :  { %2650 = vrcp.f32 %v1757_v58 }
0x2047   :  { %v2651_v31 = vpop.eup %2650 }
0x20ac   :  { %v1777_v32 = vpop.permute.xlu0 %1776 }
0x20ad   :  { %v1779_v33 = vmul.f32 %v2651_v31, %v1777_v32 }
0x20af   :  { %v1780_v34 = vpack.c.bf16 %v1779_v33, %v1779_v33 }
0x20b1   :  { %2366 = vmatmul.mubr.msk.bf16.vlgmr.msra.gmra.mrb[48].mxu1 %vm182_vm0, %v1780_v34 }
0x20b2   :  { %1943 = vmatpush1.bf16.msra.mxu1 %v3276_v9  ;;  %1974 = vmatprep.mubr.bf16.mxu1 %v2836_v0 }
0x20b3   :  { %1944 = vmatprep.subr.bf16.mxu1 %v3280_v18 }
0x20b6   :  { %1945 = vmatpush1.bf16.msra.mxu1 %v3283_v21 }
0x20b7   :  { %1946 = vmatprep.subr.bf16.mxu1 %v3286_v62 }
0x20ba   :  { %1947 = vmatpush1.bf16.msra.mxu1 %v3289_v25 }
0x20bb   :  { %1948 = vmatprep.subr.bf16.mxu1 %v3293_v27 }
0x20be   :  { %1949 = vmatpush1.bf16.msra.mxu1 %v3296_v59 }
0x20bf   :  { %2100 = vmatprep.subr.bf16.mxu1 %v3274_v7 }
0x2184   :  { %v1818_v63 = vpop.f32.mrb[48].mxu1 }
0x2185   :  { %v1827_v37 = vadd.f32 %v1818_v63, %v1297_v35  ;;  %v1820_v6 = vpop.f32.mrb[49].mxu1 }
0x2186   :  { %v1828_v38 = vadd.f32 %v1820_v6, %v1299_v36  ;;  %v1822_v2 = vpop.f32.mrb[50].mxu1  ;;  %v1307_v6 = vadd.f32 %v3265_v3, %v3332_v42 }
0x2187   :  { %v1823_v39 = vpop.f32.mrb[51].mxu1  ;;  %v2367_v41 = vmul.f32 -1.442695, %v1827_v37 }
0x2188   :  { %2652 = vtanh.f32 %v1828_v38  ;;  %v2368_v17 = vmul.f32 -1.442695, %v1828_v38 }
0x2189   :  { %2654 = vpow2.f32 %v2367_v41 }
0x2192   :  { %v2653_v40 = vpop.eup %2652 }
0x2193   :  { %1844 = vrot.lane.b32.xlu1 %v2653_v40, %s2837_s3  ;;  %v2655_v28 = vpop.eup %2654 }
0x2194   :  { %v1835_v7 = vadd.f32 1.0, %v2655_v28 }
0x2196   :  { %2656 = vrcp.f32 %v1835_v7 }
0x21a0   :  { %v2657_v23 = vpop.eup %2656 }
0x21a1   :  { %v1842_v14 = vmul.f32 %v2657_v23, %v1773_v20 }
0x2205   :  { %v1845_v12 = vpop.permute.xlu1 %1844 }
0x2206   :  { %v1847_v24 = vmul.f32 %v2657_v23, %v1845_v12 }
0x2208   :  { %1849 = vrot.lane.b32.xlu0 %v1847_v24, %s2837_s3 }
0x227a   :  { %v1850_v48 = vpop.permute.xlu0 %1849 }
0x227b   :  { %v1852_v15 = vadd.f32 %v1850_v48, %v1842_v14 }
0x227d   :  { %2658 = vtanh.f32 %v1852_v15 }
0x227e   :  { %2660 = vpow2.f32 %v2368_v17 }
0x2287   :  { %v2659_v11 = vpop.eup %2658 }
0x2288   :  { %1855 = vrot.lane.b32.xlu1 %v2659_v11, %s2837_s3  ;;  %v2661_v43 = vpop.eup %2660 }
0x2289   :  { %v1836_v44 = vadd.f32 1.0, %v2661_v43  ;;  %v1313_v43 = vadd.f32 %v3390_v49, %v3332_v42 }
0x228b   :  { %2662 = vrcp.f32 %v1836_v44  ;;  %v1315_v44 = vadd.f32 %v3392_v46, %v3336_v29 }
0x2295   :  { %v2663_v45 = vpop.eup %2662 }
0x22fa   :  { %v1856_v13 = vpop.permute.xlu1 %1855 }
0x22fb   :  { %v1858_v22 = vmul.f32 %v2663_v45, %v1856_v13 }
0x22fd   :  { %v1859_v51 = vpack.c.bf16 %v1858_v22, %v1858_v22 }
0x22ff   :  { %2369 = vmatmul.mubr.msk.bf16.vlgmr.msra.gmra.mrb[52].mxu0 %vm182_vm0, %v1859_v51 }
0x2300   :  { %2022 = vmatpush1.bf16.msra.mxu0 %v3276_v9  ;;  %2053 = vmatprep.mubr.bf16.mxu0 %v2836_v0 }
0x2301   :  { %2023 = vmatprep.subr.bf16.mxu0 %v3280_v18 }
0x2304   :  { %2024 = vmatpush1.bf16.msra.mxu0 %v3283_v21 }
0x2305   :  { %2025 = vmatprep.subr.bf16.mxu0 %v3286_v62 }
0x2308   :  { %2026 = vmatpush1.bf16.msra.mxu0 %v3289_v25 }
0x2309   :  { %2027 = vmatprep.subr.bf16.mxu0 %v3293_v27 }
0x230c   :  { %2028 = vmatpush1.bf16.msra.mxu0 %v3296_v59 }
0x23d2   :  { %v1897_v1 = vpop.f32.mrb[52].mxu0 }
0x23d3   :  { %v1906_v47 = vadd.f32 %v1897_v1, %v1303_v4  ;;  %v1899_v53 = vpop.f32.mrb[53].mxu0 }
0x23d4   :  { %v1907_v54 = vadd.f32 %v1899_v53, %v1305_v52  ;;  %v1901_v55 = vpop.f32.mrb[54].mxu0 }
0x23d5   :  { %v1902_v8 = vpop.f32.mrb[55].mxu0  ;;  %v2370_v10 = vmul.f32 -1.442695, %v1906_v47 }
0x23d6   :  { %2664 = vtanh.f32 %v1907_v54  ;;  %v2371_v32 = vmul.f32 -1.442695, %v1907_v54 }
0x23d7   :  { %2666 = vpow2.f32 %v2370_v10 }
0x23e0   :  { %v2665_v56 = vpop.eup %2664 }
0x23e1   :  { %1923 = vrot.lane.b32.xlu0 %v2665_v56, %s2837_s3  ;;  %v2667_v57 = vpop.eup %2666 }
0x23e2   :  { %v1914_v20 = vadd.f32 1.0, %v2667_v57 }
0x23e4   :  { %2668 = vrcp.f32 %v1914_v20 }
0x23ee   :  { %v2669_v26 = vpop.eup %2668 }
0x23ef   :  { %v1921_v50 = vmul.f32 %v2669_v26, %v1852_v15 }
0x2453   :  { %v1924_v16 = vpop.permute.xlu0 %1923 }
0x2454   :  { %v1926_v30 = vmul.f32 %v2669_v26, %v1924_v16 }
0x2456   :  { %1928 = vrot.lane.b32.xlu1 %v1926_v30, %s2837_s3 }
0x24c8   :  { %v1929_v60 = vpop.permute.xlu1 %1928 }
0x24c9   :  { %v1931_v58 = vadd.f32 %v1929_v60, %v1921_v50 }
0x24cb   :  { %2670 = vtanh.f32 %v1931_v58 }
0x24cc   :  { %2672 = vpow2.f32 %v2371_v32  ;;  %v1319_v32 = vadd.f32 %v3396_v19, %v3336_v29  ;;  %v2838_v19 = vmov 0.0  }
0x24cd   :  { %2392 = vmatprep.subr.bf16.mxu0 %v2838_v19 }
0x24d5   :  { %v2671_v31 = vpop.eup %2670 }
0x24d6   :  { %1934 = vrot.lane.b32.xlu0 %v2671_v31, %s2837_s3  ;;  %v2673_v33 = vpop.eup %2672  ;;  %v1317_v31 = vadd.f32 %v3394_v5, %v3332_v42 }
0x24d7   :  { %v1915_v34 = vadd.f32 1.0, %v2673_v33 }
0x24d9   :  { %2674 = vrcp.f32 %v1915_v34 }
0x24e3   :  { %v2675_v35 = vpop.eup %2674 }
0x2548   :  { %v1935_v36 = vpop.permute.xlu0 %1934 }
0x2549   :  { %v1937_v63 = vmul.f32 %v2675_v35, %v1935_v36 }
0x254b   :  { %v1938_v37 = vpack.c.bf16 %v1937_v63, %v1937_v63 }
0x254d   :  { %2372 = vmatmul.mubr.msk.bf16.vlgmr.msra.gmra.mrb[52].mxu1 %vm182_vm0, %v1938_v37 }
0x254e   :  { %2101 = vmatpush1.bf16.msra.mxu1 %v3276_v9  ;;  %2132 = vmatprep.mubr.bf16.mxu1 %v2836_v0  ;;  %v1309_v9 = vadd.f32 %v3267_v61, %v3336_v29  ;;  %v2468_v29 = vld [vmem:[%s3535_s7] sm:$0xff]  }
0x254f   :  { %2102 = vmatprep.subr.bf16.mxu1 %v3280_v18 }
0x2552   :  { %2103 = vmatpush1.bf16.msra.mxu1 %v3283_v21 }
0x2553   :  { %2104 = vmatprep.subr.bf16.mxu1 %v3286_v62 }
0x2556   :  { %2105 = vmatpush1.bf16.msra.mxu1 %v3289_v25 }
0x2557   :  { %2106 = vmatprep.subr.bf16.mxu1 %v3293_v27 }
0x255a   :  { %2107 = vmatpush1.bf16.msra.mxu1 %v3296_v59 }
0x2620   :  { %v1976_v38 = vpop.f32.mrb[52].mxu1 }
0x2621   :  { %v1985_v0 = vadd.f32 %v1976_v38, %v1307_v6  ;;  %v1978_v2 = vpop.f32.mrb[53].mxu1 }
0x2622   :  { %v1986_v18 = vadd.f32 %v1978_v2, %v1309_v9  ;;  %v1980_v39 = vpop.f32.mrb[54].mxu1 }
0x2623   :  { %v1981_v21 = vpop.f32.mrb[55].mxu1  ;;  %v2373_v25 = vmul.f32 -1.442695, %v1985_v0  ;;  %v2470_v39 = vld [vmem:[%s3535_s7 + $0x10] sm:$0xff]  }
0x2624   :  { %2676 = vtanh.f32 %v1986_v18  ;;  %v2374_v12 = vmul.f32 -1.442695, %v1986_v18  ;;  %v2469_v18 = vld [vmem:[%s3535_s7 + $0x8] sm:$0xff]  }
0x2625   :  { %2678 = vpow2.f32 %v2373_v25  ;;  %v2471_v25 = vld [vmem:[%s3535_s7 + $0x18] sm:$0xff]  }
0x262e   :  { %v2677_v62 = vpop.eup %2676 }
0x262f   :  { %2002 = vrot.lane.b32.xlu1 %v2677_v62, %s2837_s3  ;;  %v2679_v27 = vpop.eup %2678 }
0x2630   :  { %v1993_v59 = vadd.f32 1.0, %v2679_v27 }
0x2632   :  { %2680 = vrcp.f32 %v1993_v59 }
0x263c   :  { %v2681_v40 = vpop.eup %2680 }
0x263d   :  { %v2000_v61 = vmul.f32 %v2681_v40, %v1931_v58 }
0x26a1   :  { %v2003_v3 = vpop.permute.xlu1 %2002 }
0x26a2   :  { %v2005_v41 = vmul.f32 %v2681_v40, %v2003_v3 }
0x26a4   :  { %2007 = vrot.lane.b32.xlu0 %v2005_v41, %s2837_s3 }
0x2716   :  { %v2008_v28 = vpop.permute.xlu0 %2007 }
0x2717   :  { %v2010_v7 = vadd.f32 %v2008_v28, %v2000_v61 }
0x2719   :  { %2682 = vtanh.f32 %v2010_v7 }
0x271a   :  { %2684 = vpow2.f32 %v2374_v12  ;;  %v2381_v12 = vld [vmem:[%s3536_s8] ss:$0 sm:$0xff] }
0x2723   :  { %v2683_v23 = vpop.eup %2682 }
0x2724   :  { %2013 = vrot.lane.b32.xlu1 %v2683_v23, %s2837_s3  ;;  %v2685_v24 = vpop.eup %2684 }
0x2725   :  { %v1994_v14 = vadd.f32 1.0, %v2685_v24 }
0x2727   :  { %2686 = vrcp.f32 %v1994_v14 }
0x2731   :  { %v2687_v48 = vpop.eup %2686 }
0x2796   :  { %v2014_v15 = vpop.permute.xlu1 %2013 }
0x2797   :  { %v2016_v11 = vmul.f32 %v2687_v48, %v2014_v15 }
0x2799   :  { %v2017_v17 = vpack.c.bf16 %v2016_v11, %v2016_v11 }
0x279b   :  { %2375 = vmatmul.mubr.msk.bf16.vlgmr.msra.gmra.mrb[56].mxu0 %vm182_vm0, %v2017_v17 }
0x279c   :  { %2393 = vmatpush3.bf16.msra.mxu0 %v2468_v29  ;;  %2400 = vmatprep.mubr.msk.bf16.mxu0 %vm2839_vm1, %v2838_v19 }
0x279d   :  { %2394 = vmatprep.subr.bf16.mxu0 %v2838_v19 }
0x27a0   :  { %2395 = vmatpush3.bf16.msra.mxu0 %v2469_v18 }
0x27a1   :  { %2396 = vmatprep.subr.bf16.mxu0 %v2838_v19 }
0x27a4   :  { %2397 = vmatpush3.bf16.msra.mxu0 %v2470_v39 }
0x27a5   :  { %2398 = vmatprep.subr.bf16.mxu0 %v2838_v19 }
0x27a8   :  { %2399 = vmatpush3.bf16.msra.mxu0 %v2471_v25 }
0x286e   :  { %v2055_v45 = vpop.f32.mrb[56].mxu0 }
0x286f   :  { %v2064_v13 = vadd.f32 %v2055_v45, %v1313_v43  ;;  %v2057_v22 = vpop.f32.mrb[57].mxu0 }
0x2870   :  { %v2065_v51 = vadd.f32 %v2057_v22, %v1315_v44  ;;  %v2059_v4 = vpop.f32.mrb[58].mxu0 }
0x2871   :  { %v2060_v52 = vpop.f32.mrb[59].mxu0  ;;  %v2376_v47 = vmul.f32 -1.442695, %v2064_v13 }
0x2872   :  { %2688 = vtanh.f32 %v2065_v51  ;;  %v2377_v20 = vmul.f32 -1.442695, %v2065_v51 }
0x2873   :  { %2690 = vpow2.f32 %v2376_v47 }
0x287c   :  { %v2689_v1 = vpop.eup %2688 }
0x287d   :  { %2081 = vrot.lane.b32.xlu0 %v2689_v1, %s2837_s3  ;;  %v2691_v53 = vpop.eup %2690 }
0x287e   :  { %v2072_v54 = vadd.f32 1.0, %v2691_v53 }
0x2880   :  { %2692 = vrcp.f32 %v2072_v54 }
0x288a   :  { %v2693_v55 = vpop.eup %2692 }
0x288b   :  { %v2079_v46 = vmul.f32 %v2693_v55, %v2010_v7 }
0x28ef   :  { %v2082_v49 = vpop.permute.xlu0 %2081 }
0x28f0   :  { %v2084_v8 = vmul.f32 %v2693_v55, %v2082_v49 }
0x28f2   :  { %2086 = vrot.lane.b32.xlu1 %v2084_v8, %s2837_s3 }
0x2964   :  { %v2087_v56 = vpop.permute.xlu1 %2086 }
0x2965   :  { %v2089_v10 = vadd.f32 %v2087_v56, %v2079_v46 }
0x2967   :  { %2694 = vtanh.f32 %v2089_v10 }
0x2968   :  { %2696 = vpow2.f32 %v2377_v20 }
0x2971   :  { %v2695_v57 = vpop.eup %2694 }
0x2972   :  { %2092 = vrot.lane.b32.xlu0 %v2695_v57, %s2837_s3  ;;  %v2697_v26 = vpop.eup %2696 }
0x2973   :  { %v2073_v16 = vadd.f32 1.0, %v2697_v26 }
0x2975   :  { %2698 = vrcp.f32 %v2073_v16 }
0x297f   :  { %v2699_v30 = vpop.eup %2698 }
0x29e4   :  { %v2093_v50 = vpop.permute.xlu0 %2092 }
0x29e5   :  { %v2095_v60 = vmul.f32 %v2699_v30, %v2093_v50 }
0x29e7   :  { %v2096_v58 = vpack.c.bf16 %v2095_v60, %v2095_v60 }
0x29e9   :  { %2378 = vmatmul.mubr.msk.bf16.vlgmr.msra.gmra.mrb[56].mxu1 %vm182_vm0, %v2096_v58 }
0x2abc   :  { %v2134_v33 = vpop.f32.mrb[56].mxu1 }
0x2abd   :  { %v2143_v34 = vadd.f32 %v2134_v33, %v1317_v31  ;;  %v2136_v35 = vpop.f32.mrb[57].mxu1 }
0x2abe   :  { %v2144_v36 = vadd.f32 %v2136_v35, %v1319_v32  ;;  %v2138_v63 = vpop.f32.mrb[58].mxu1 }
0x2abf   :  { %v2139_v37 = vpop.f32.mrb[59].mxu1  ;;  %v2379_v9 = vmul.f32 -1.442695, %v2143_v34 }
0x2ac0   :  { %2700 = vtanh.f32 %v2144_v36  ;;  %v2380_v40 = vmul.f32 -1.442695, %v2144_v36 }
0x2ac1   :  { %2702 = vpow2.f32 %v2379_v9 }
0x2aca   :  { %v2701_v6 = vpop.eup %2700 }
0x2acb   :  { %2160 = vrot.lane.b32.xlu1 %v2701_v6, %s2837_s3  ;;  %v2703_v38 = vpop.eup %2702 }
0x2acc   :  { %v2151_v0 = vadd.f32 1.0, %v2703_v38 }
0x2ace   :  { %2704 = vrcp.f32 %v2151_v0 }
0x2ad8   :  { %v2705_v2 = vpop.eup %2704 }
0x2ad9   :  { %v2158_v21 = vmul.f32 %v2705_v2, %v2089_v10 }
0x2b3d   :  { %v2161_v42 = vpop.permute.xlu1 %2160 }
0x2b3e   :  { %v2163_v5 = vmul.f32 %v2705_v2, %v2161_v42 }
0x2b40   :  { %2165 = vrot.lane.b32.xlu0 %v2163_v5, %s2837_s3 }
0x2bb2   :  { %v2166_v62 = vpop.permute.xlu0 %2165 }
0x2bb3   :  { %v2168_v27 = vadd.f32 %v2166_v62, %v2158_v21 }
0x2bb5   :  { %2706 = vtanh.f32 %v2168_v27 }
0x2bb6   :  { %2708 = vpow2.f32 %v2380_v40 }
0x2bbf   :  { %v2707_v59 = vpop.eup %2706 }
0x2bc0   :  { %2171 = vrot.lane.b32.xlu1 %v2707_v59, %s2837_s3  ;;  %v2709_v3 = vpop.eup %2708 }
0x2bc1   :  { %v2152_v41 = vadd.f32 1.0, %v2709_v3 }
0x2bc3   :  { %2710 = vrcp.f32 %v2152_v41 }
0x2bcd   :  { %v2711_v61 = vpop.eup %2710 }
0x2c32   :  { %v2172_v28 = vpop.permute.xlu1 %2171 }
0x2c33   :  { %v2174_v7 = vmul.f32 %v2711_v61, %v2172_v28 }
0x2c35   :  { %v2175_v23 = vpack.c.bf16 %v2174_v7, %v2174_v7 }
0x2c37   :  { %2401 = vmatmul.mubr.msk.bf16.vlgmr.msra.gmra.mrb[60].mxu0 %vm182_vm0, %v2175_v23 }
0x2d0a   :  { %v2252_v24 = vpop.f32.mrb[60].mxu0 }
0x2d0b   :  { %v2253_v14 = vadd.f32 %v2381_v12, %v2252_v24  ;;  %v2402_v48 = vpop.f32.mrb[61].mxu0 }
0x2d0c   :  { %v2255_v15 = vpop.f32.mrb[62].mxu0 }
0x2d0d   :  { %2258 = vst [vmem:[#allocation12] sm:$0xff] %v2253_v14  ;;  %v2403_v11 = vpop.f32.mrb[63].mxu0 }
0x2d0e   :  { %2811 = shalt.err (!%p2808_p8)
}
0x2d0f   :  { %s2812_s8 = scalar_lea.hbm %s3537_s9, 128 }
0x2d10   :  { %p2813_p9 = scmp.ne.s32.totalorder %s3537_s9, %s2812_s8  ;;  %p2816_p10 = scmp.lt.u32.totalorder %s2812_s8, %s3537_s9 }
0x2d12   :  { %p2818_p11 = pnand %p2816_p10, %p2813_p9 }
0x2d14   :  { %2821 = shalt.err (!%p2818_p11)
}
0x2d15   :  { %2268 = dma.vmem_to_hbm [thread:$0]  %s2266_s26, 128, %s3537_s9, [#allocation6]  }
0x2d16   :  { %2828 = dma.done.wait [#allocation6], 128  }
0x2d17   :  { %2829 = vsyncadd [#allocation6], 4294967168 }
0x2d18   :  { %2272 = vsyncpa [#allocation5], 1 }
0x2d19   :  { %2273 = vsyncpa [#allocation8], 1 }
0x2d1a   :  { %2274 = vsyncpa [#allocation11], 1 }
0x2d1b   :  { %2275 = vsyncpa [#allocation6], 1 }

</bundles_post_ra>
